<compile_context>
chip_gen: v5e
topology: v5e:2x2
jax: 0.10.0
libtpu: 0.0.40
codegen_flags: <defaults>
</compile_context>

<pallas_src>
import math

import jax
import jax.numpy as jnp
from jax import lax
from jax.experimental import pallas as pl
from jax.experimental.pallas import tpu as pltpu

# ---------------- model config ("args") -----------------
ITEM_SIZE = 64          # args.item_size
HIDDEN = 32             # args.hidden_size
MAX_SEQ = 8             # args.max_seq_length
NUM_HEADS = 2           # args.num_attention_heads
HEAD_DIM = HIDDEN // NUM_HEADS
NUM_LAYERS = 2          # args.num_hidden_layers
FFN_DIM = 4 * HIDDEN
INIT_RANGE = 0.02       # args.initializer_range
LN_EPS = 1e-12

# ---------------- batch tiling policy -----------------
_BB_CAP = 128      # max sequences per grid block (rows = BB*S feeds MXU M dim)
_SPLIT_MIN = 64    # split across >=2 blocks (v7x: 2 TCs) only if each >= this


# ---------------- in-kernel helpers -----------------
def _layernorm(x, g, b):
    # Single-pass statistics (one cross-lane reduction + one whole-tensor
    # subtract fewer than the centered two-pass form); variance clamped at 0.
    m = jnp.mean(x, axis=-1, keepdims=True)
    m2 = jnp.mean(x * x, axis=-1, keepdims=True)
    var = jnp.maximum(m2 - m * m, 0.0)
    return (x - m) * lax.rsqrt(var + LN_EPS) * g + b


def _gelu(x):
    # Exact (erf-based) GELU, matching the torch reference numerics.
    return x * 0.5 * (1.0 + lax.erf(x * (1.0 / math.sqrt(2.0))))


def _bf16(x):
    # Cast narrowly, immediately before matmuls (VPU/EUP math stays f32).
    return x.astype(jnp.bfloat16)


# ---------------- fused forward kernel -----------------
def sasrec_fused_kernel(ids_ref, pad_ref, tab_ref, pos_ref, eg_ref, eb_ref,
                        wq_ref, bq_ref, wk_ref, bk_ref, wv_ref, bv_ref,
                        wo_ref, bo_ref, ag_ref, ab_ref,
                        w1_ref, b1_ref, w2_ref, b2_ref, fg_ref, fb_ref,
                        out_ref):
    BB, S, H = out_ref.shape
    rows = BB * S

    # ---- item embedding lookup as a bf16 one-hot matmul (exact gather) ----
    ids = ids_ref[...]                                            # (BB, S, 1) i32
    item_iota = lax.broadcasted_iota(jnp.int32, (BB, S, ITEM_SIZE), 2)
    onehot = (ids == item_iota).astype(jnp.bfloat16)              # (BB, S, ITEM)
    item_emb = jnp.dot(onehot.reshape(rows, ITEM_SIZE), tab_ref[...],
                       preferred_element_type=jnp.float32)        # (rows, H) f32

    # ---- + position embedding, LayerNorm ----
    x = item_emb.reshape(BB, S, H) + pos_ref[...][None, :, :]
    x = _layernorm(x.reshape(rows, H), eg_ref[...], eb_ref[...])  # (rows, H)
    # TODO(synk): nn.Dropout omitted (eval mode / p = 0 -> identity).

    # ---- additive attention mask from padding flags (built in-kernel) ----
    r = lax.broadcasted_iota(jnp.int32, (S, S), 0)
    c = lax.broadcasted_iota(jnp.int32, (S, S), 1)
    causal = (r >= c).astype(jnp.float32)                         # (S, S)
    keep = pad_ref[...] * causal                                  # (BB, S, S)
    addmask = (1.0 - keep) * -10000.0
    # NOTE: fully-padded query rows get a uniform softmax (all keys -10000),
    # matching the torch model's behavior — intentionally not "fixed".

    # ---- transformer layers (static unroll; weights resident in VMEM) ----
    for l in range(NUM_LAYERS):
        # --- multi-head self-attention: merged (rows,H)x(H,H) projections,
        #     per-head static lane slices only for the tiny score/PV einsums,
        #     lane-concat of contexts, single merged out-projection. ---
        xb = _bf16(x)
        q = jnp.dot(xb, wq_ref[l], preferred_element_type=jnp.float32) + bq_ref[l]
        k = jnp.dot(xb, wk_ref[l], preferred_element_type=jnp.float32) + bk_ref[l]
        v = jnp.dot(xb, wv_ref[l], preferred_element_type=jnp.float32) + bv_ref[l]
        # 1/sqrt(HEAD_DIM) is already folded into wq (and bq) at param prep.

        ctx_heads = []
        for h in range(NUM_HEADS):
            sl = slice(h * HEAD_DIM, (h + 1) * HEAD_DIM)
            q3 = _bf16(q[:, sl]).reshape(BB, S, HEAD_DIM)
            k3 = _bf16(k[:, sl]).reshape(BB, S, HEAD_DIM)
            v3 = _bf16(v[:, sl]).reshape(BB, S, HEAD_DIM)
            s = jnp.einsum("bqd,bkd->bqk", q3, k3,
                           preferred_element_type=jnp.float32)    # (BB, S, S)
            s = s + addmask
            s = s - jnp.max(s, axis=-1, keepdims=True)
            p = jnp.exp(s)
            p = p * pl.reciprocal(jnp.sum(p, axis=-1, keepdims=True),
                                  approx=True)
            ctx = jnp.einsum("bqk,bkd->bqd", _bf16(p), v3,
                             preferred_element_type=jnp.float32)  # (BB, S, HD)
            ctx_heads.append(ctx.reshape(rows, HEAD_DIM))

        ctx = jnp.concatenate(ctx_heads, axis=-1)                 # (rows, H)
        o = jnp.dot(_bf16(ctx), wo_ref[l],
                    preferred_element_type=jnp.float32) + bo_ref[l]
        x = _layernorm(o + x, ag_ref[l], ab_ref[l])

        # --- position-wise feed-forward ---
        hdn = jnp.dot(_bf16(x), w1_ref[l],
                      preferred_element_type=jnp.float32) + b1_ref[l]
        hdn = _gelu(hdn)
        o2 = jnp.dot(_bf16(hdn), w2_ref[l],
                     preferred_element_type=jnp.float32) + b2_ref[l]
        x = _layernorm(o2 + x, fg_ref[l], fb_ref[l])

    out_ref[...] = x.reshape(BB, S, H).astype(out_ref.dtype)


# ---------------- pallas_call wrapper -----------------
def _const_spec(shape):
    n = len(shape)
    return pl.BlockSpec(shape, lambda i, _n=n: (0,) * _n)


def _choose_tiling(B):
    """Returns (sequences_per_block, padded_batch)."""
    if B >= 2 * _SPLIT_MIN:
        # Large batch: >=2 blocks so v7x's 2 TensorCores both get work, each
        # block still >= _SPLIT_MIN sequences; block count 8-aligned.
        bb = min(_BB_CAP, -(-B // 2))
        bb = -(-bb // 8) * 8
    else:
        # Small batch (v5e/v6e single TC, or an underfilled v7x): one block.
        bb = max(B, 1)
    padded = -(-B // bb) * bb
    return bb, padded


def sasrec_forward(params, input_ids):
    B, S = input_ids.shape
    H, L, F = HIDDEN, NUM_LAYERS, FFN_DIM
    BB, padded_B = _choose_tiling(B)
    nb = padded_B // BB

    ids = input_ids.astype(jnp.int32)
    if padded_B != B:
        ids = jnp.pad(ids, ((0, padded_B - B), (0, 0)))   # pad with item 0

    # Two tiny views of input_ids, laid out for their in-kernel use:
    #   (B, S, 1): sequence position on sublanes  -> one-hot embedding gather
    #   (B, 1, S): key position on lanes          -> padding part of the mask
    ids_sub = ids.reshape(padded_B, S, 1)
    pad_lane = (ids > 0).astype(jnp.float32).reshape(padded_B, 1, S)

    bf = jnp.bfloat16
    in_specs = [
        pl.BlockSpec((BB, S, 1), lambda i: (i, 0, 0)),
        pl.BlockSpec((BB, 1, S), lambda i: (i, 0, 0)),
        _const_spec((ITEM_SIZE, H)),   # item table (bf16)
        _const_spec((S, H)),           # position table
        _const_spec((1, H)),           # emb LN gamma
        _const_spec((1, H)),           # emb LN beta
        _const_spec((L, H, H)),        # wq (scale folded in, bf16)
        _const_spec((L, 1, H)),        # bq
        _const_spec((L, H, H)),        # wk (bf16)
        _const_spec((L, 1, H)),        # bk
        _const_spec((L, H, H)),        # wv (bf16)
        _const_spec((L, 1, H)),        # bv
        _const_spec((L, H, H)),        # wo (bf16)
        _const_spec((L, 1, H)),        # bo
        _const_spec((L, 1, H)),        # attn LN gamma
        _const_spec((L, 1, H)),        # attn LN beta
        _const_spec((L, H, F)),        # w1 (bf16)
        _const_spec((L, 1, F)),        # b1
        _const_spec((L, F, H)),        # w2 (bf16)
        _const_spec((L, 1, H)),        # b2
        _const_spec((L, 1, H)),        # ffn LN gamma
        _const_spec((L, 1, H)),        # ffn LN beta
    ]

    out = pl.pallas_call(
        sasrec_fused_kernel,
        out_shape=jax.ShapeDtypeStruct((padded_B, S, H), jnp.float32),
        grid=(nb,),
        in_specs=in_specs,
        out_specs=pl.BlockSpec((BB, S, H), lambda i: (i, 0, 0)),
        compiler_params=pltpu.CompilerParams(
            dimension_semantics=("parallel",)),
    )(ids_sub, pad_lane,
      params["item_emb"].astype(bf), params["pos_emb"],
      params["emb_ln_g"], params["emb_ln_b"],
      params["wq"].astype(bf), params["bq"],
      params["wk"].astype(bf), params["bk"],
      params["wv"].astype(bf), params["bv"],
      params["wo"].astype(bf), params["bo"],
      params["attn_ln_g"], params["attn_ln_b"],
      params["w1"].astype(bf), params["b1"],
      params["w2"].astype(bf), params["b2"],
      params["ffn_ln_g"], params["ffn_ln_b"])

    return out[:B] if padded_B != B else out


# ---------------- parameter init (deterministic, mirrors init_weights) ----
def init_params(key):
    ks = iter(jax.random.split(key, 2 + NUM_LAYERS * 6))

    def normal(k, shape):
        return INIT_RANGE * jax.random.normal(k, shape, jnp.float32)

    # NOTE: self.apply(init_weights) in torch re-randomizes the whole item
    # embedding table (incl. the padding_idx row), so we do the same.
    item_emb = normal(next(ks), (ITEM_SIZE, HIDDEN))
    pos_emb = normal(next(ks), (MAX_SEQ, HIDDEN))

    wq, wk, wv, wo, w1, w2 = [], [], [], [], [], []
    for _ in range(NUM_LAYERS):
        wq.append(normal(next(ks), (HIDDEN, HIDDEN)))
        wk.append(normal(next(ks), (HIDDEN, HIDDEN)))
        wv.append(normal(next(ks), (HIDDEN, HIDDEN)))
        wo.append(normal(next(ks), (HIDDEN, HIDDEN)))
        w1.append(normal(next(ks), (HIDDEN, FFN_DIM)))
        w2.append(normal(next(ks), (FFN_DIM, HIDDEN)))

    scale = 1.0 / math.sqrt(HEAD_DIM)   # folded into wq (bq is zero anyway)
    z = jnp.zeros
    return {
        "item_emb": item_emb,
        "pos_emb": pos_emb,
        "emb_ln_g": jnp.ones((1, HIDDEN), jnp.float32),
        "emb_ln_b": z((1, HIDDEN), jnp.float32),
        "wq": jnp.stack(wq) * scale,                              # (L,H,H)
        "bq": z((NUM_LAYERS, 1, HIDDEN), jnp.float32),
        "wk": jnp.stack(wk),
        "bk": z((NUM_LAYERS, 1, HIDDEN), jnp.float32),
        "wv": jnp.stack(wv),
        "bv": z((NUM_LAYERS, 1, HIDDEN), jnp.float32),
        "wo": jnp.stack(wo),                                      # (L,H,H)
        "bo": z((NUM_LAYERS, 1, HIDDEN), jnp.float32),
        "attn_ln_g": jnp.ones((NUM_LAYERS, 1, HIDDEN), jnp.float32),
        "attn_ln_b": z((NUM_LAYERS, 1, HIDDEN), jnp.float32),
        "w1": jnp.stack(w1),                                      # (L,H,F)
        "b1": z((NUM_LAYERS, 1, FFN_DIM), jnp.float32),
        "w2": jnp.stack(w2),                                      # (L,F,H)
        "b2": z((NUM_LAYERS, 1, HIDDEN), jnp.float32),
        "ffn_ln_g": jnp.ones((NUM_LAYERS, 1, HIDDEN), jnp.float32),
        "ffn_ln_b": z((NUM_LAYERS, 1, HIDDEN), jnp.float32),
    }


if __name__ == "__main__":
    key = jax.random.PRNGKey(0)
    kp, kx = jax.random.split(key)
    params = init_params(kp)

    batch = 2
    input_ids = jax.random.randint(kx, (batch, MAX_SEQ), 0, ITEM_SIZE,
                                   dtype=jnp.int32)

    out = jax.jit(sasrec_forward)(params, input_ids)
    jax.block_until_ready(out)
    assert out.shape == (batch, MAX_SEQ, HIDDEN)
    assert bool(jnp.all(jnp.isfinite(out)))
    print("KERNEL_OK")
</pallas_src>

<mosaic_0001>
module attributes {stable_mosaic.version = 11 : i64} {
  func.func @sasrec_fused_kernel(%arg0: i32, %arg1: memref<2x8x1xi32, #tpu.memory_space<vmem>>, %arg2: memref<2x1x8xf32, #tpu.memory_space<vmem>>, %arg3: memref<64x32xbf16, #tpu.memory_space<vmem>>, %arg4: memref<8x32xf32, #tpu.memory_space<vmem>>, %arg5: memref<1x32xf32, #tpu.memory_space<vmem>>, %arg6: memref<1x32xf32, #tpu.memory_space<vmem>>, %arg7: memref<2x32x32xbf16, #tpu.memory_space<vmem>>, %arg8: memref<2x1x32xf32, #tpu.memory_space<vmem>>, %arg9: memref<2x32x32xbf16, #tpu.memory_space<vmem>>, %arg10: memref<2x1x32xf32, #tpu.memory_space<vmem>>, %arg11: memref<2x32x32xbf16, #tpu.memory_space<vmem>>, %arg12: memref<2x1x32xf32, #tpu.memory_space<vmem>>, %arg13: memref<2x32x32xbf16, #tpu.memory_space<vmem>>, %arg14: memref<2x1x32xf32, #tpu.memory_space<vmem>>, %arg15: memref<2x1x32xf32, #tpu.memory_space<vmem>>, %arg16: memref<2x1x32xf32, #tpu.memory_space<vmem>>, %arg17: memref<2x32x128xbf16, #tpu.memory_space<vmem>>, %arg18: memref<2x1x128xf32, #tpu.memory_space<vmem>>, %arg19: memref<2x128x32xbf16, #tpu.memory_space<vmem>>, %arg20: memref<2x1x32xf32, #tpu.memory_space<vmem>>, %arg21: memref<2x1x32xf32, #tpu.memory_space<vmem>>, %arg22: memref<2x1x32xf32, #tpu.memory_space<vmem>>, %arg23: memref<2x8x32xf32, #tpu.memory_space<vmem>>) attributes {dimension_semantics = [#tpu.dimension_semantics<parallel>], iteration_bounds = array<i64: 1>, scalar_prefetch = 0 : i64, scratch_operands = 0 : i64, tpu.core_type = #tpu.core_type<tc>, window_params = [{transform_indices = @transform_0, window_bounds = array<i64: 2, 8, 1>}, {transform_indices = @transform_1, window_bounds = array<i64: 2, 1, 8>}, {pipeline_mode = #tpu.pipeline_mode<synchronous>, transform_indices = @transform_2, window_bounds = array<i64: 64, 32>}, {pipeline_mode = #tpu.pipeline_mode<synchronous>, transform_indices = @transform_3, window_bounds = array<i64: 8, 32>}, {pipeline_mode = #tpu.pipeline_mode<synchronous>, transform_indices = @transform_4, window_bounds = array<i64: 1, 32>}, {pipeline_mode = #tpu.pipeline_mode<synchronous>, transform_indices = @transform_5, window_bounds = array<i64: 1, 32>}, {pipeline_mode = #tpu.pipeline_mode<synchronous>, transform_indices = @transform_6, window_bounds = array<i64: 2, 32, 32>}, {pipeline_mode = #tpu.pipeline_mode<synchronous>, transform_indices = @transform_7, window_bounds = array<i64: 2, 1, 32>}, {pipeline_mode = #tpu.pipeline_mode<synchronous>, transform_indices = @transform_8, window_bounds = array<i64: 2, 32, 32>}, {pipeline_mode = #tpu.pipeline_mode<synchronous>, transform_indices = @transform_9, window_bounds = array<i64: 2, 1, 32>}, {pipeline_mode = #tpu.pipeline_mode<synchronous>, transform_indices = @transform_10, window_bounds = array<i64: 2, 32, 32>}, {pipeline_mode = #tpu.pipeline_mode<synchronous>, transform_indices = @transform_11, window_bounds = array<i64: 2, 1, 32>}, {pipeline_mode = #tpu.pipeline_mode<synchronous>, transform_indices = @transform_12, window_bounds = array<i64: 2, 32, 32>}, {pipeline_mode = #tpu.pipeline_mode<synchronous>, transform_indices = @transform_13, window_bounds = array<i64: 2, 1, 32>}, {pipeline_mode = #tpu.pipeline_mode<synchronous>, transform_indices = @transform_14, window_bounds = array<i64: 2, 1, 32>}, {pipeline_mode = #tpu.pipeline_mode<synchronous>, transform_indices = @transform_15, window_bounds = array<i64: 2, 1, 32>}, {pipeline_mode = #tpu.pipeline_mode<synchronous>, transform_indices = @transform_16, window_bounds = array<i64: 2, 32, 128>}, {pipeline_mode = #tpu.pipeline_mode<synchronous>, transform_indices = @transform_17, window_bounds = array<i64: 2, 1, 128>}, {pipeline_mode = #tpu.pipeline_mode<synchronous>, transform_indices = @transform_18, window_bounds = array<i64: 2, 128, 32>}, {pipeline_mode = #tpu.pipeline_mode<synchronous>, transform_indices = @transform_19, window_bounds = array<i64: 2, 1, 32>}, {pipeline_mode = #tpu.pipeline_mode<synchronous>, transform_indices = @transform_20, window_bounds = array<i64: 2, 1, 32>}, {pipeline_mode = #tpu.pipeline_mode<synchronous>, transform_indices = @transform_21, window_bounds = array<i64: 2, 1, 32>}, {transform_indices = @transform_22, window_bounds = array<i64: 2, 8, 32>}]} {
    %c0 = arith.constant 0 : index
    %c0_0 = arith.constant 0 : index
    %c0_1 = arith.constant 0 : index
    %0 = vector.load %arg1[%c0, %c0_0, %c0_1] : memref<2x8x1xi32, #tpu.memory_space<vmem>>, vector<2x8x1xi32>
    %1 = tpu.iota {dimensions = array<i32: 2>} : vector<2x8x64xi32>
    %2 = vector.broadcast %0 : vector<2x8x1xi32> to vector<2x8x64xi32>
    %3 = arith.cmpi eq, %2, %1 : vector<2x8x64xi32>
    %4 = arith.extui %3 : vector<2x8x64xi1> to vector<2x8x64xi32>
    %5 = arith.sitofp %4 : vector<2x8x64xi32> to vector<2x8x64xf32>
    %6 = arith.truncf %5 : vector<2x8x64xf32> to vector<2x8x64xbf16>
    %7 = vector.shape_cast %6 : vector<2x8x64xbf16> to vector<16x64xbf16>
    %c0_2 = arith.constant 0 : index
    %c0_3 = arith.constant 0 : index
    %8 = vector.load %arg3[%c0_2, %c0_3] : memref<64x32xbf16, #tpu.memory_space<vmem>>, vector<64x32xbf16>
    %cst = arith.constant dense<0.000000e+00> : vector<16x32xf32>
    %9 = tpu.matmul %7, %8, %cst {dimension_numbers = #tpu.dot_dimension_numbers<[1], [0], [0], [1], [0, 0, 1, 1], [], []>} : vector<16x64xbf16>, vector<64x32xbf16>, vector<16x32xf32> -> vector<16x32xf32>
    %10 = vector.shape_cast %9 : vector<16x32xf32> to vector<2x8x32xf32>
    %c0_4 = arith.constant 0 : index
    %c0_5 = arith.constant 0 : index
    %11 = vector.load %arg4[%c0_4, %c0_5] : memref<8x32xf32, #tpu.memory_space<vmem>>, vector<8x32xf32>
    %12 = vector.shape_cast %11 : vector<8x32xf32> to vector<1x8x32xf32>
    %13 = vector.broadcast %12 : vector<1x8x32xf32> to vector<2x8x32xf32>
    %14 = arith.addf %10, %13 : vector<2x8x32xf32>
    %15 = vector.shape_cast %14 : vector<2x8x32xf32> to vector<16x32xf32>
    %c0_6 = arith.constant 0 : index
    %c0_7 = arith.constant 0 : index
    %16 = vector.load %arg5[%c0_6, %c0_7] : memref<1x32xf32, #tpu.memory_space<vmem>>, vector<1x32xf32>
    %c0_8 = arith.constant 0 : index
    %c0_9 = arith.constant 0 : index
    %17 = vector.load %arg6[%c0_8, %c0_9] : memref<1x32xf32, #tpu.memory_space<vmem>>, vector<1x32xf32>
    %cst_10 = arith.constant dense<0.000000e+00> : vector<16xf32>
    %18 = vector.multi_reduction <add>, %15, %cst_10 [1] : vector<16x32xf32> to vector<16xf32>
    %19 = vector.shape_cast %18 : vector<16xf32> to vector<16x1xf32>
    %cst_11 = arith.constant 3.200000e+01 : f32
    %20 = vector.broadcast %cst_11 : f32 to vector<16x1xf32>
    %21 = arith.divf %19, %20 : vector<16x1xf32>
    %22 = arith.mulf %15, %15 : vector<16x32xf32>
    %cst_12 = arith.constant dense<0.000000e+00> : vector<16xf32>
    %23 = vector.multi_reduction <add>, %22, %cst_12 [1] : vector<16x32xf32> to vector<16xf32>
    %24 = vector.shape_cast %23 : vector<16xf32> to vector<16x1xf32>
    %cst_13 = arith.constant 3.200000e+01 : f32
    %25 = vector.broadcast %cst_13 : f32 to vector<16x1xf32>
    %26 = arith.divf %24, %25 : vector<16x1xf32>
    %27 = arith.mulf %21, %21 : vector<16x1xf32>
    %28 = arith.subf %26, %27 : vector<16x1xf32>
    %cst_14 = arith.constant 0.000000e+00 : f32
    %29 = vector.broadcast %cst_14 : f32 to vector<16x1xf32>
    %30 = arith.maximumf %28, %29 : vector<16x1xf32>
    %31 = vector.broadcast %21 : vector<16x1xf32> to vector<16x32xf32>
    %32 = arith.subf %15, %31 : vector<16x32xf32>
    %cst_15 = arith.constant 9.99999996E-13 : f32
    %33 = vector.broadcast %cst_15 : f32 to vector<16x1xf32>
    %34 = arith.addf %30, %33 : vector<16x1xf32>
    %35 = math.rsqrt %34 : vector<16x1xf32>
    %36 = vector.broadcast %35 : vector<16x1xf32> to vector<16x32xf32>
    %37 = arith.mulf %32, %36 : vector<16x32xf32>
    %38 = vector.broadcast %16 : vector<1x32xf32> to vector<16x32xf32>
    %39 = arith.mulf %37, %38 : vector<16x32xf32>
    %40 = vector.broadcast %17 : vector<1x32xf32> to vector<16x32xf32>
    %41 = arith.addf %39, %40 : vector<16x32xf32>
    %42 = tpu.iota {dimensions = array<i32: 0>} : vector<8x8xi32>
    %43 = tpu.iota {dimensions = array<i32: 1>} : vector<8x8xi32>
    %44 = arith.cmpi sge, %42, %43 : vector<8x8xi32>
    %45 = arith.extui %44 : vector<8x8xi1> to vector<8x8xi32>
    %46 = arith.sitofp %45 : vector<8x8xi32> to vector<8x8xf32>
    %c0_16 = arith.constant 0 : index
    %c0_17 = arith.constant 0 : index
    %c0_18 = arith.constant 0 : index
    %47 = vector.load %arg2[%c0_16, %c0_17, %c0_18] : memref<2x1x8xf32, #tpu.memory_space<vmem>>, vector<2x1x8xf32>
    %48 = vector.shape_cast %46 : vector<8x8xf32> to vector<1x8x8xf32>
    %49 = vector.broadcast %47 : vector<2x1x8xf32> to vector<2x8x8xf32>
    %50 = vector.broadcast %48 : vector<1x8x8xf32> to vector<2x8x8xf32>
    %51 = arith.mulf %49, %50 : vector<2x8x8xf32>
    %cst_19 = arith.constant 1.000000e+00 : f32
    %52 = vector.broadcast %cst_19 : f32 to vector<2x8x8xf32>
    %53 = arith.subf %52, %51 : vector<2x8x8xf32>
    %cst_20 = arith.constant -1.000000e+04 : f32
    %54 = vector.broadcast %cst_20 : f32 to vector<2x8x8xf32>
    %55 = arith.mulf %53, %54 : vector<2x8x8xf32>
    %56 = arith.truncf %41 : vector<16x32xf32> to vector<16x32xbf16>
    %c0_21 = arith.constant 0 : index
    %c0_22 = arith.constant 0 : index
    %c0_23 = arith.constant 0 : index
    %57 = vector.load %arg7[%c0_21, %c0_22, %c0_23] : memref<2x32x32xbf16, #tpu.memory_space<vmem>>, vector<1x32x32xbf16>
    %58 = vector.shape_cast %57 : vector<1x32x32xbf16> to vector<32x32xbf16>
    %cst_24 = arith.constant dense<0.000000e+00> : vector<16x32xf32>
    %59 = tpu.matmul %56, %58, %cst_24 {dimension_numbers = #tpu.dot_dimension_numbers<[1], [0], [0], [1], [0, 0, 1, 1], [], []>} : vector<16x32xbf16>, vector<32x32xbf16>, vector<16x32xf32> -> vector<16x32xf32>
    %c0_25 = arith.constant 0 : index
    %c0_26 = arith.constant 0 : index
    %c0_27 = arith.constant 0 : index
    %60 = vector.load %arg8[%c0_25, %c0_26, %c0_27] : memref<2x1x32xf32, #tpu.memory_space<vmem>>, vector<1x1x32xf32>
    %61 = vector.shape_cast %60 : vector<1x1x32xf32> to vector<1x32xf32>
    %62 = vector.broadcast %61 : vector<1x32xf32> to vector<16x32xf32>
    %63 = arith.addf %59, %62 : vector<16x32xf32>
    %c0_28 = arith.constant 0 : index
    %c0_29 = arith.constant 0 : index
    %c0_30 = arith.constant 0 : index
    %64 = vector.load %arg9[%c0_28, %c0_29, %c0_30] : memref<2x32x32xbf16, #tpu.memory_space<vmem>>, vector<1x32x32xbf16>
    %65 = vector.shape_cast %64 : vector<1x32x32xbf16> to vector<32x32xbf16>
    %cst_31 = arith.constant dense<0.000000e+00> : vector<16x32xf32>
    %66 = tpu.matmul %56, %65, %cst_31 {dimension_numbers = #tpu.dot_dimension_numbers<[1], [0], [0], [1], [0, 0, 1, 1], [], []>} : vector<16x32xbf16>, vector<32x32xbf16>, vector<16x32xf32> -> vector<16x32xf32>
    %c0_32 = arith.constant 0 : index
    %c0_33 = arith.constant 0 : index
    %c0_34 = arith.constant 0 : index
    %67 = vector.load %arg10[%c0_32, %c0_33, %c0_34] : memref<2x1x32xf32, #tpu.memory_space<vmem>>, vector<1x1x32xf32>
    %68 = vector.shape_cast %67 : vector<1x1x32xf32> to vector<1x32xf32>
    %69 = vector.broadcast %68 : vector<1x32xf32> to vector<16x32xf32>
    %70 = arith.addf %66, %69 : vector<16x32xf32>
    %c0_35 = arith.constant 0 : index
    %c0_36 = arith.constant 0 : index
    %c0_37 = arith.constant 0 : index
    %71 = vector.load %arg11[%c0_35, %c0_36, %c0_37] : memref<2x32x32xbf16, #tpu.memory_space<vmem>>, vector<1x32x32xbf16>
    %72 = vector.shape_cast %71 : vector<1x32x32xbf16> to vector<32x32xbf16>
    %cst_38 = arith.constant dense<0.000000e+00> : vector<16x32xf32>
    %73 = tpu.matmul %56, %72, %cst_38 {dimension_numbers = #tpu.dot_dimension_numbers<[1], [0], [0], [1], [0, 0, 1, 1], [], []>} : vector<16x32xbf16>, vector<32x32xbf16>, vector<16x32xf32> -> vector<16x32xf32>
    %c0_39 = arith.constant 0 : index
    %c0_40 = arith.constant 0 : index
    %c0_41 = arith.constant 0 : index
    %74 = vector.load %arg12[%c0_39, %c0_40, %c0_41] : memref<2x1x32xf32, #tpu.memory_space<vmem>>, vector<1x1x32xf32>
    %75 = vector.shape_cast %74 : vector<1x1x32xf32> to vector<1x32xf32>
    %76 = vector.broadcast %75 : vector<1x32xf32> to vector<16x32xf32>
    %77 = arith.addf %73, %76 : vector<16x32xf32>
    %78 = vector.extract_strided_slice %63 {offsets = [0, 0], sizes = [16, 16], strides = [1, 1]} : vector<16x32xf32> to vector<16x16xf32>
    %79 = arith.truncf %78 : vector<16x16xf32> to vector<16x16xbf16>
    %80 = vector.shape_cast %79 : vector<16x16xbf16> to vector<2x8x16xbf16>
    %81 = vector.extract_strided_slice %70 {offsets = [0, 0], sizes = [16, 16], strides = [1, 1]} : vector<16x32xf32> to vector<16x16xf32>
    %82 = arith.truncf %81 : vector<16x16xf32> to vector<16x16xbf16>
    %83 = vector.shape_cast %82 : vector<16x16xbf16> to vector<2x8x16xbf16>
    %84 = vector.extract_strided_slice %77 {offsets = [0, 0], sizes = [16, 16], strides = [1, 1]} : vector<16x32xf32> to vector<16x16xf32>
    %85 = arith.truncf %84 : vector<16x16xf32> to vector<16x16xbf16>
    %86 = vector.shape_cast %85 : vector<16x16xbf16> to vector<2x8x16xbf16>
    "tpu.trace_start"() <{level = 10 : i32, message = "bqd,bkd->bqk"}> : () -> ()
    %cst_42 = arith.constant dense<0.000000e+00> : vector<2x8x8xf32>
    %87 = tpu.matmul %80, %83, %cst_42 {dimension_numbers = #tpu.dot_dimension_numbers<[2], [2], [1], [1], [0, 0, 0, 1, 1, 1], [0], [0]>} : vector<2x8x16xbf16>, vector<2x8x16xbf16>, vector<2x8x8xf32> -> vector<2x8x8xf32>
    "tpu.trace_stop"() : () -> ()
    %88 = arith.addf %87, %55 : vector<2x8x8xf32>
    %cst_43 = arith.constant dense<0xFF800000> : vector<2x8xf32>
    %89 = vector.multi_reduction <maximumf>, %88, %cst_43 [2] : vector<2x8x8xf32> to vector<2x8xf32>
    %90 = vector.shape_cast %89 : vector<2x8xf32> to vector<2x8x1xf32>
    %91 = vector.broadcast %90 : vector<2x8x1xf32> to vector<2x8x8xf32>
    %92 = arith.subf %88, %91 : vector<2x8x8xf32>
    %93 = math.exp %92 : vector<2x8x8xf32>
    %cst_44 = arith.constant dense<0.000000e+00> : vector<2x8xf32>
    %94 = vector.multi_reduction <add>, %93, %cst_44 [2] : vector<2x8x8xf32> to vector<2x8xf32>
    %95 = vector.shape_cast %94 : vector<2x8xf32> to vector<2x8x1xf32>
    %96 = tpu.reciprocal %95 {approx = true} : vector<2x8x1xf32> -> vector<2x8x1xf32>
    %97 = vector.broadcast %96 : vector<2x8x1xf32> to vector<2x8x8xf32>
    %98 = arith.mulf %93, %97 : vector<2x8x8xf32>
    %99 = arith.truncf %98 : vector<2x8x8xf32> to vector<2x8x8xbf16>
    "tpu.trace_start"() <{level = 10 : i32, message = "bqk,bkd->bqd"}> : () -> ()
    %cst_45 = arith.constant dense<0.000000e+00> : vector<2x8x16xf32>
    %100 = tpu.matmul %99, %86, %cst_45 {dimension_numbers = #tpu.dot_dimension_numbers<[2], [1], [1], [2], [0, 0, 0, 1, 1, 2], [0], [0]>} : vector<2x8x8xbf16>, vector<2x8x16xbf16>, vector<2x8x16xf32> -> vector<2x8x16xf32>
    "tpu.trace_stop"() : () -> ()
    %101 = vector.shape_cast %100 : vector<2x8x16xf32> to vector<16x16xf32>
    %102 = vector.extract_strided_slice %63 {offsets = [0, 16], sizes = [16, 16], strides = [1, 1]} : vector<16x32xf32> to vector<16x16xf32>
    %103 = arith.truncf %102 : vector<16x16xf32> to vector<16x16xbf16>
    %104 = vector.shape_cast %103 : vector<16x16xbf16> to vector<2x8x16xbf16>
    %105 = vector.extract_strided_slice %70 {offsets = [0, 16], sizes = [16, 16], strides = [1, 1]} : vector<16x32xf32> to vector<16x16xf32>
    %106 = arith.truncf %105 : vector<16x16xf32> to vector<16x16xbf16>
    %107 = vector.shape_cast %106 : vector<16x16xbf16> to vector<2x8x16xbf16>
    %108 = vector.extract_strided_slice %77 {offsets = [0, 16], sizes = [16, 16], strides = [1, 1]} : vector<16x32xf32> to vector<16x16xf32>
    %109 = arith.truncf %108 : vector<16x16xf32> to vector<16x16xbf16>
    %110 = vector.shape_cast %109 : vector<16x16xbf16> to vector<2x8x16xbf16>
    "tpu.trace_start"() <{level = 10 : i32, message = "bqd,bkd->bqk"}> : () -> ()
    %cst_46 = arith.constant dense<0.000000e+00> : vector<2x8x8xf32>
    %111 = tpu.matmul %104, %107, %cst_46 {dimension_numbers = #tpu.dot_dimension_numbers<[2], [2], [1], [1], [0, 0, 0, 1, 1, 1], [0], [0]>} : vector<2x8x16xbf16>, vector<2x8x16xbf16>, vector<2x8x8xf32> -> vector<2x8x8xf32>
    "tpu.trace_stop"() : () -> ()
    %112 = arith.addf %111, %55 : vector<2x8x8xf32>
    %cst_47 = arith.constant dense<0xFF800000> : vector<2x8xf32>
    %113 = vector.multi_reduction <maximumf>, %112, %cst_47 [2] : vector<2x8x8xf32> to vector<2x8xf32>
    %114 = vector.shape_cast %113 : vector<2x8xf32> to vector<2x8x1xf32>
    %115 = vector.broadcast %114 : vector<2x8x1xf32> to vector<2x8x8xf32>
    %116 = arith.subf %112, %115 : vector<2x8x8xf32>
    %117 = math.exp %116 : vector<2x8x8xf32>
    %cst_48 = arith.constant dense<0.000000e+00> : vector<2x8xf32>
    %118 = vector.multi_reduction <add>, %117, %cst_48 [2] : vector<2x8x8xf32> to vector<2x8xf32>
    %119 = vector.shape_cast %118 : vector<2x8xf32> to vector<2x8x1xf32>
    %120 = tpu.reciprocal %119 {approx = true} : vector<2x8x1xf32> -> vector<2x8x1xf32>
    %121 = vector.broadcast %120 : vector<2x8x1xf32> to vector<2x8x8xf32>
    %122 = arith.mulf %117, %121 : vector<2x8x8xf32>
    %123 = arith.truncf %122 : vector<2x8x8xf32> to vector<2x8x8xbf16>
    "tpu.trace_start"() <{level = 10 : i32, message = "bqk,bkd->bqd"}> : () -> ()
    %cst_49 = arith.constant dense<0.000000e+00> : vector<2x8x16xf32>
    %124 = tpu.matmul %123, %110, %cst_49 {dimension_numbers = #tpu.dot_dimension_numbers<[2], [1], [1], [2], [0, 0, 0, 1, 1, 2], [0], [0]>} : vector<2x8x8xbf16>, vector<2x8x16xbf16>, vector<2x8x16xf32> -> vector<2x8x16xf32>
    "tpu.trace_stop"() : () -> ()
    %125 = vector.shape_cast %124 : vector<2x8x16xf32> to vector<16x16xf32>
    %126 = tpu.concatenate %101, %125 in 1 : vector<16x16xf32>, vector<16x16xf32> -> vector<16x32xf32>
    %127 = arith.truncf %126 : vector<16x32xf32> to vector<16x32xbf16>
    %c0_50 = arith.constant 0 : index
    %c0_51 = arith.constant 0 : index
    %c0_52 = arith.constant 0 : index
    %128 = vector.load %arg13[%c0_50, %c0_51, %c0_52] : memref<2x32x32xbf16, #tpu.memory_space<vmem>>, vector<1x32x32xbf16>
    %129 = vector.shape_cast %128 : vector<1x32x32xbf16> to vector<32x32xbf16>
    %cst_53 = arith.constant dense<0.000000e+00> : vector<16x32xf32>
    %130 = tpu.matmul %127, %129, %cst_53 {dimension_numbers = #tpu.dot_dimension_numbers<[1], [0], [0], [1], [0, 0, 1, 1], [], []>} : vector<16x32xbf16>, vector<32x32xbf16>, vector<16x32xf32> -> vector<16x32xf32>
    %c0_54 = arith.constant 0 : index
    %c0_55 = arith.constant 0 : index
    %c0_56 = arith.constant 0 : index
    %131 = vector.load %arg14[%c0_54, %c0_55, %c0_56] : memref<2x1x32xf32, #tpu.memory_space<vmem>>, vector<1x1x32xf32>
    %132 = vector.shape_cast %131 : vector<1x1x32xf32> to vector<1x32xf32>
    %133 = vector.broadcast %132 : vector<1x32xf32> to vector<16x32xf32>
    %134 = arith.addf %130, %133 : vector<16x32xf32>
    %135 = arith.addf %134, %41 : vector<16x32xf32>
    %c0_57 = arith.constant 0 : index
    %c0_58 = arith.constant 0 : index
    %c0_59 = arith.constant 0 : index
    %136 = vector.load %arg15[%c0_57, %c0_58, %c0_59] : memref<2x1x32xf32, #tpu.memory_space<vmem>>, vector<1x1x32xf32>
    %137 = vector.shape_cast %136 : vector<1x1x32xf32> to vector<1x32xf32>
    %c0_60 = arith.constant 0 : index
    %c0_61 = arith.constant 0 : index
    %c0_62 = arith.constant 0 : index
    %138 = vector.load %arg16[%c0_60, %c0_61, %c0_62] : memref<2x1x32xf32, #tpu.memory_space<vmem>>, vector<1x1x32xf32>
    %139 = vector.shape_cast %138 : vector<1x1x32xf32> to vector<1x32xf32>
    %cst_63 = arith.constant dense<0.000000e+00> : vector<16xf32>
    %140 = vector.multi_reduction <add>, %135, %cst_63 [1] : vector<16x32xf32> to vector<16xf32>
    %141 = vector.shape_cast %140 : vector<16xf32> to vector<16x1xf32>
    %cst_64 = arith.constant 3.200000e+01 : f32
    %142 = vector.broadcast %cst_64 : f32 to vector<16x1xf32>
    %143 = arith.divf %141, %142 : vector<16x1xf32>
    %144 = arith.mulf %135, %135 : vector<16x32xf32>
    %cst_65 = arith.constant dense<0.000000e+00> : vector<16xf32>
    %145 = vector.multi_reduction <add>, %144, %cst_65 [1] : vector<16x32xf32> to vector<16xf32>
    %146 = vector.shape_cast %145 : vector<16xf32> to vector<16x1xf32>
    %cst_66 = arith.constant 3.200000e+01 : f32
    %147 = vector.broadcast %cst_66 : f32 to vector<16x1xf32>
    %148 = arith.divf %146, %147 : vector<16x1xf32>
    %149 = arith.mulf %143, %143 : vector<16x1xf32>
    %150 = arith.subf %148, %149 : vector<16x1xf32>
    %cst_67 = arith.constant 0.000000e+00 : f32
    %151 = vector.broadcast %cst_67 : f32 to vector<16x1xf32>
    %152 = arith.maximumf %150, %151 : vector<16x1xf32>
    %153 = vector.broadcast %143 : vector<16x1xf32> to vector<16x32xf32>
    %154 = arith.subf %135, %153 : vector<16x32xf32>
    %cst_68 = arith.constant 9.99999996E-13 : f32
    %155 = vector.broadcast %cst_68 : f32 to vector<16x1xf32>
    %156 = arith.addf %152, %155 : vector<16x1xf32>
    %157 = math.rsqrt %156 : vector<16x1xf32>
    %158 = vector.broadcast %157 : vector<16x1xf32> to vector<16x32xf32>
    %159 = arith.mulf %154, %158 : vector<16x32xf32>
    %160 = vector.broadcast %137 : vector<1x32xf32> to vector<16x32xf32>
    %161 = arith.mulf %159, %160 : vector<16x32xf32>
    %162 = vector.broadcast %139 : vector<1x32xf32> to vector<16x32xf32>
    %163 = arith.addf %161, %162 : vector<16x32xf32>
    %164 = arith.truncf %163 : vector<16x32xf32> to vector<16x32xbf16>
    %c0_69 = arith.constant 0 : index
    %c0_70 = arith.constant 0 : index
    %c0_71 = arith.constant 0 : index
    %165 = vector.load %arg17[%c0_69, %c0_70, %c0_71] : memref<2x32x128xbf16, #tpu.memory_space<vmem>>, vector<1x32x128xbf16>
    %166 = vector.shape_cast %165 : vector<1x32x128xbf16> to vector<32x128xbf16>
    %cst_72 = arith.constant dense<0.000000e+00> : vector<16x128xf32>
    %167 = tpu.matmul %164, %166, %cst_72 {dimension_numbers = #tpu.dot_dimension_numbers<[1], [0], [0], [1], [0, 0, 1, 1], [], []>} : vector<16x32xbf16>, vector<32x128xbf16>, vector<16x128xf32> -> vector<16x128xf32>
    %c0_73 = arith.constant 0 : index
    %c0_74 = arith.constant 0 : index
    %c0_75 = arith.constant 0 : index
    %168 = vector.load %arg18[%c0_73, %c0_74, %c0_75] : memref<2x1x128xf32, #tpu.memory_space<vmem>>, vector<1x1x128xf32>
    %169 = vector.shape_cast %168 : vector<1x1x128xf32> to vector<1x128xf32>
    %170 = vector.broadcast %169 : vector<1x128xf32> to vector<16x128xf32>
    %171 = arith.addf %167, %170 : vector<16x128xf32>
    %cst_76 = arith.constant 5.000000e-01 : f32
    %172 = vector.broadcast %cst_76 : f32 to vector<16x128xf32>
    %173 = arith.mulf %171, %172 : vector<16x128xf32>
    %cst_77 = arith.constant 0.707106769 : f32
    %174 = vector.broadcast %cst_77 : f32 to vector<16x128xf32>
    %175 = arith.mulf %171, %174 : vector<16x128xf32>
    %176 = math.erf %175 : vector<16x128xf32>
    %cst_78 = arith.constant 1.000000e+00 : f32
    %177 = vector.broadcast %cst_78 : f32 to vector<16x128xf32>
    %178 = arith.addf %177, %176 : vector<16x128xf32>
    %179 = arith.mulf %173, %178 : vector<16x128xf32>
    %180 = arith.truncf %179 : vector<16x128xf32> to vector<16x128xbf16>
    %c0_79 = arith.constant 0 : index
    %c0_80 = arith.constant 0 : index
    %c0_81 = arith.constant 0 : index
    %181 = vector.load %arg19[%c0_79, %c0_80, %c0_81] : memref<2x128x32xbf16, #tpu.memory_space<vmem>>, vector<1x128x32xbf16>
    %182 = vector.shape_cast %181 : vector<1x128x32xbf16> to vector<128x32xbf16>
    %cst_82 = arith.constant dense<0.000000e+00> : vector<16x32xf32>
    %183 = tpu.matmul %180, %182, %cst_82 {dimension_numbers = #tpu.dot_dimension_numbers<[1], [0], [0], [1], [0, 0, 1, 1], [], []>} : vector<16x128xbf16>, vector<128x32xbf16>, vector<16x32xf32> -> vector<16x32xf32>
    %c0_83 = arith.constant 0 : index
    %c0_84 = arith.constant 0 : index
    %c0_85 = arith.constant 0 : index
    %184 = vector.load %arg20[%c0_83, %c0_84, %c0_85] : memref<2x1x32xf32, #tpu.memory_space<vmem>>, vector<1x1x32xf32>
    %185 = vector.shape_cast %184 : vector<1x1x32xf32> to vector<1x32xf32>
    %186 = vector.broadcast %185 : vector<1x32xf32> to vector<16x32xf32>
    %187 = arith.addf %183, %186 : vector<16x32xf32>
    %188 = arith.addf %187, %163 : vector<16x32xf32>
    %c0_86 = arith.constant 0 : index
    %c0_87 = arith.constant 0 : index
    %c0_88 = arith.constant 0 : index
    %189 = vector.load %arg21[%c0_86, %c0_87, %c0_88] : memref<2x1x32xf32, #tpu.memory_space<vmem>>, vector<1x1x32xf32>
    %190 = vector.shape_cast %189 : vector<1x1x32xf32> to vector<1x32xf32>
    %c0_89 = arith.constant 0 : index
    %c0_90 = arith.constant 0 : index
    %c0_91 = arith.constant 0 : index
    %191 = vector.load %arg22[%c0_89, %c0_90, %c0_91] : memref<2x1x32xf32, #tpu.memory_space<vmem>>, vector<1x1x32xf32>
    %192 = vector.shape_cast %191 : vector<1x1x32xf32> to vector<1x32xf32>
    %cst_92 = arith.constant dense<0.000000e+00> : vector<16xf32>
    %193 = vector.multi_reduction <add>, %188, %cst_92 [1] : vector<16x32xf32> to vector<16xf32>
    %194 = vector.shape_cast %193 : vector<16xf32> to vector<16x1xf32>
    %cst_93 = arith.constant 3.200000e+01 : f32
    %195 = vector.broadcast %cst_93 : f32 to vector<16x1xf32>
    %196 = arith.divf %194, %195 : vector<16x1xf32>
    %197 = arith.mulf %188, %188 : vector<16x32xf32>
    %cst_94 = arith.constant dense<0.000000e+00> : vector<16xf32>
    %198 = vector.multi_reduction <add>, %197, %cst_94 [1] : vector<16x32xf32> to vector<16xf32>
    %199 = vector.shape_cast %198 : vector<16xf32> to vector<16x1xf32>
    %cst_95 = arith.constant 3.200000e+01 : f32
    %200 = vector.broadcast %cst_95 : f32 to vector<16x1xf32>
    %201 = arith.divf %199, %200 : vector<16x1xf32>
    %202 = arith.mulf %196, %196 : vector<16x1xf32>
    %203 = arith.subf %201, %202 : vector<16x1xf32>
    %cst_96 = arith.constant 0.000000e+00 : f32
    %204 = vector.broadcast %cst_96 : f32 to vector<16x1xf32>
    %205 = arith.maximumf %203, %204 : vector<16x1xf32>
    %206 = vector.broadcast %196 : vector<16x1xf32> to vector<16x32xf32>
    %207 = arith.subf %188, %206 : vector<16x32xf32>
    %cst_97 = arith.constant 9.99999996E-13 : f32
    %208 = vector.broadcast %cst_97 : f32 to vector<16x1xf32>
    %209 = arith.addf %205, %208 : vector<16x1xf32>
    %210 = math.rsqrt %209 : vector<16x1xf32>
    %211 = vector.broadcast %210 : vector<16x1xf32> to vector<16x32xf32>
    %212 = arith.mulf %207, %211 : vector<16x32xf32>
    %213 = vector.broadcast %190 : vector<1x32xf32> to vector<16x32xf32>
    %214 = arith.mulf %212, %213 : vector<16x32xf32>
    %215 = vector.broadcast %192 : vector<1x32xf32> to vector<16x32xf32>
    %216 = arith.addf %214, %215 : vector<16x32xf32>
    %217 = arith.truncf %216 : vector<16x32xf32> to vector<16x32xbf16>
    %c1 = arith.constant 1 : index
    %c0_98 = arith.constant 0 : index
    %c0_99 = arith.constant 0 : index
    %218 = vector.load %arg7[%c1, %c0_98, %c0_99] : memref<2x32x32xbf16, #tpu.memory_space<vmem>>, vector<1x32x32xbf16>
    %219 = vector.shape_cast %218 : vector<1x32x32xbf16> to vector<32x32xbf16>
    %cst_100 = arith.constant dense<0.000000e+00> : vector<16x32xf32>
    %220 = tpu.matmul %217, %219, %cst_100 {dimension_numbers = #tpu.dot_dimension_numbers<[1], [0], [0], [1], [0, 0, 1, 1], [], []>} : vector<16x32xbf16>, vector<32x32xbf16>, vector<16x32xf32> -> vector<16x32xf32>
    %c1_101 = arith.constant 1 : index
    %c0_102 = arith.constant 0 : index
    %c0_103 = arith.constant 0 : index
    %221 = vector.load %arg8[%c1_101, %c0_102, %c0_103] : memref<2x1x32xf32, #tpu.memory_space<vmem>>, vector<1x1x32xf32>
    %222 = vector.shape_cast %221 : vector<1x1x32xf32> to vector<1x32xf32>
    %223 = vector.broadcast %222 : vector<1x32xf32> to vector<16x32xf32>
    %224 = arith.addf %220, %223 : vector<16x32xf32>
    %c1_104 = arith.constant 1 : index
    %c0_105 = arith.constant 0 : index
    %c0_106 = arith.constant 0 : index
    %225 = vector.load %arg9[%c1_104, %c0_105, %c0_106] : memref<2x32x32xbf16, #tpu.memory_space<vmem>>, vector<1x32x32xbf16>
    %226 = vector.shape_cast %225 : vector<1x32x32xbf16> to vector<32x32xbf16>
    %cst_107 = arith.constant dense<0.000000e+00> : vector<16x32xf32>
    %227 = tpu.matmul %217, %226, %cst_107 {dimension_numbers = #tpu.dot_dimension_numbers<[1], [0], [0], [1], [0, 0, 1, 1], [], []>} : vector<16x32xbf16>, vector<32x32xbf16>, vector<16x32xf32> -> vector<16x32xf32>
    %c1_108 = arith.constant 1 : index
    %c0_109 = arith.constant 0 : index
    %c0_110 = arith.constant 0 : index
    %228 = vector.load %arg10[%c1_108, %c0_109, %c0_110] : memref<2x1x32xf32, #tpu.memory_space<vmem>>, vector<1x1x32xf32>
    %229 = vector.shape_cast %228 : vector<1x1x32xf32> to vector<1x32xf32>
    %230 = vector.broadcast %229 : vector<1x32xf32> to vector<16x32xf32>
    %231 = arith.addf %227, %230 : vector<16x32xf32>
    %c1_111 = arith.constant 1 : index
    %c0_112 = arith.constant 0 : index
    %c0_113 = arith.constant 0 : index
    %232 = vector.load %arg11[%c1_111, %c0_112, %c0_113] : memref<2x32x32xbf16, #tpu.memory_space<vmem>>, vector<1x32x32xbf16>
    %233 = vector.shape_cast %232 : vector<1x32x32xbf16> to vector<32x32xbf16>
    %cst_114 = arith.constant dense<0.000000e+00> : vector<16x32xf32>
    %234 = tpu.matmul %217, %233, %cst_114 {dimension_numbers = #tpu.dot_dimension_numbers<[1], [0], [0], [1], [0, 0, 1, 1], [], []>} : vector<16x32xbf16>, vector<32x32xbf16>, vector<16x32xf32> -> vector<16x32xf32>
    %c1_115 = arith.constant 1 : index
    %c0_116 = arith.constant 0 : index
    %c0_117 = arith.constant 0 : index
    %235 = vector.load %arg12[%c1_115, %c0_116, %c0_117] : memref<2x1x32xf32, #tpu.memory_space<vmem>>, vector<1x1x32xf32>
    %236 = vector.shape_cast %235 : vector<1x1x32xf32> to vector<1x32xf32>
    %237 = vector.broadcast %236 : vector<1x32xf32> to vector<16x32xf32>
    %238 = arith.addf %234, %237 : vector<16x32xf32>
    %239 = vector.extract_strided_slice %224 {offsets = [0, 0], sizes = [16, 16], strides = [1, 1]} : vector<16x32xf32> to vector<16x16xf32>
    %240 = arith.truncf %239 : vector<16x16xf32> to vector<16x16xbf16>
    %241 = vector.shape_cast %240 : vector<16x16xbf16> to vector<2x8x16xbf16>
    %242 = vector.extract_strided_slice %231 {offsets = [0, 0], sizes = [16, 16], strides = [1, 1]} : vector<16x32xf32> to vector<16x16xf32>
    %243 = arith.truncf %242 : vector<16x16xf32> to vector<16x16xbf16>
    %244 = vector.shape_cast %243 : vector<16x16xbf16> to vector<2x8x16xbf16>
    %245 = vector.extract_strided_slice %238 {offsets = [0, 0], sizes = [16, 16], strides = [1, 1]} : vector<16x32xf32> to vector<16x16xf32>
    %246 = arith.truncf %245 : vector<16x16xf32> to vector<16x16xbf16>
    %247 = vector.shape_cast %246 : vector<16x16xbf16> to vector<2x8x16xbf16>
    "tpu.trace_start"() <{level = 10 : i32, message = "bqd,bkd->bqk"}> : () -> ()
    %cst_118 = arith.constant dense<0.000000e+00> : vector<2x8x8xf32>
    %248 = tpu.matmul %241, %244, %cst_118 {dimension_numbers = #tpu.dot_dimension_numbers<[2], [2], [1], [1], [0, 0, 0, 1, 1, 1], [0], [0]>} : vector<2x8x16xbf16>, vector<2x8x16xbf16>, vector<2x8x8xf32> -> vector<2x8x8xf32>
    "tpu.trace_stop"() : () -> ()
    %249 = arith.addf %248, %55 : vector<2x8x8xf32>
    %cst_119 = arith.constant dense<0xFF800000> : vector<2x8xf32>
    %250 = vector.multi_reduction <maximumf>, %249, %cst_119 [2] : vector<2x8x8xf32> to vector<2x8xf32>
    %251 = vector.shape_cast %250 : vector<2x8xf32> to vector<2x8x1xf32>
    %252 = vector.broadcast %251 : vector<2x8x1xf32> to vector<2x8x8xf32>
    %253 = arith.subf %249, %252 : vector<2x8x8xf32>
    %254 = math.exp %253 : vector<2x8x8xf32>
    %cst_120 = arith.constant dense<0.000000e+00> : vector<2x8xf32>
    %255 = vector.multi_reduction <add>, %254, %cst_120 [2] : vector<2x8x8xf32> to vector<2x8xf32>
    %256 = vector.shape_cast %255 : vector<2x8xf32> to vector<2x8x1xf32>
    %257 = tpu.reciprocal %256 {approx = true} : vector<2x8x1xf32> -> vector<2x8x1xf32>
    %258 = vector.broadcast %257 : vector<2x8x1xf32> to vector<2x8x8xf32>
    %259 = arith.mulf %254, %258 : vector<2x8x8xf32>
    %260 = arith.truncf %259 : vector<2x8x8xf32> to vector<2x8x8xbf16>
    "tpu.trace_start"() <{level = 10 : i32, message = "bqk,bkd->bqd"}> : () -> ()
    %cst_121 = arith.constant dense<0.000000e+00> : vector<2x8x16xf32>
    %261 = tpu.matmul %260, %247, %cst_121 {dimension_numbers = #tpu.dot_dimension_numbers<[2], [1], [1], [2], [0, 0, 0, 1, 1, 2], [0], [0]>} : vector<2x8x8xbf16>, vector<2x8x16xbf16>, vector<2x8x16xf32> -> vector<2x8x16xf32>
    "tpu.trace_stop"() : () -> ()
    %262 = vector.shape_cast %261 : vector<2x8x16xf32> to vector<16x16xf32>
    %263 = vector.extract_strided_slice %224 {offsets = [0, 16], sizes = [16, 16], strides = [1, 1]} : vector<16x32xf32> to vector<16x16xf32>
    %264 = arith.truncf %263 : vector<16x16xf32> to vector<16x16xbf16>
    %265 = vector.shape_cast %264 : vector<16x16xbf16> to vector<2x8x16xbf16>
    %266 = vector.extract_strided_slice %231 {offsets = [0, 16], sizes = [16, 16], strides = [1, 1]} : vector<16x32xf32> to vector<16x16xf32>
    %267 = arith.truncf %266 : vector<16x16xf32> to vector<16x16xbf16>
    %268 = vector.shape_cast %267 : vector<16x16xbf16> to vector<2x8x16xbf16>
    %269 = vector.extract_strided_slice %238 {offsets = [0, 16], sizes = [16, 16], strides = [1, 1]} : vector<16x32xf32> to vector<16x16xf32>
    %270 = arith.truncf %269 : vector<16x16xf32> to vector<16x16xbf16>
    %271 = vector.shape_cast %270 : vector<16x16xbf16> to vector<2x8x16xbf16>
    "tpu.trace_start"() <{level = 10 : i32, message = "bqd,bkd->bqk"}> : () -> ()
    %cst_122 = arith.constant dense<0.000000e+00> : vector<2x8x8xf32>
    %272 = tpu.matmul %265, %268, %cst_122 {dimension_numbers = #tpu.dot_dimension_numbers<[2], [2], [1], [1], [0, 0, 0, 1, 1, 1], [0], [0]>} : vector<2x8x16xbf16>, vector<2x8x16xbf16>, vector<2x8x8xf32> -> vector<2x8x8xf32>
    "tpu.trace_stop"() : () -> ()
    %273 = arith.addf %272, %55 : vector<2x8x8xf32>
    %cst_123 = arith.constant dense<0xFF800000> : vector<2x8xf32>
    %274 = vector.multi_reduction <maximumf>, %273, %cst_123 [2] : vector<2x8x8xf32> to vector<2x8xf32>
    %275 = vector.shape_cast %274 : vector<2x8xf32> to vector<2x8x1xf32>
    %276 = vector.broadcast %275 : vector<2x8x1xf32> to vector<2x8x8xf32>
    %277 = arith.subf %273, %276 : vector<2x8x8xf32>
    %278 = math.exp %277 : vector<2x8x8xf32>
    %cst_124 = arith.constant dense<0.000000e+00> : vector<2x8xf32>
    %279 = vector.multi_reduction <add>, %278, %cst_124 [2] : vector<2x8x8xf32> to vector<2x8xf32>
    %280 = vector.shape_cast %279 : vector<2x8xf32> to vector<2x8x1xf32>
    %281 = tpu.reciprocal %280 {approx = true} : vector<2x8x1xf32> -> vector<2x8x1xf32>
    %282 = vector.broadcast %281 : vector<2x8x1xf32> to vector<2x8x8xf32>
    %283 = arith.mulf %278, %282 : vector<2x8x8xf32>
    %284 = arith.truncf %283 : vector<2x8x8xf32> to vector<2x8x8xbf16>
    "tpu.trace_start"() <{level = 10 : i32, message = "bqk,bkd->bqd"}> : () -> ()
    %cst_125 = arith.constant dense<0.000000e+00> : vector<2x8x16xf32>
    %285 = tpu.matmul %284, %271, %cst_125 {dimension_numbers = #tpu.dot_dimension_numbers<[2], [1], [1], [2], [0, 0, 0, 1, 1, 2], [0], [0]>} : vector<2x8x8xbf16>, vector<2x8x16xbf16>, vector<2x8x16xf32> -> vector<2x8x16xf32>
    "tpu.trace_stop"() : () -> ()
    %286 = vector.shape_cast %285 : vector<2x8x16xf32> to vector<16x16xf32>
    %287 = tpu.concatenate %262, %286 in 1 : vector<16x16xf32>, vector<16x16xf32> -> vector<16x32xf32>
    %288 = arith.truncf %287 : vector<16x32xf32> to vector<16x32xbf16>
    %c1_126 = arith.constant 1 : index
    %c0_127 = arith.constant 0 : index
    %c0_128 = arith.constant 0 : index
    %289 = vector.load %arg13[%c1_126, %c0_127, %c0_128] : memref<2x32x32xbf16, #tpu.memory_space<vmem>>, vector<1x32x32xbf16>
    %290 = vector.shape_cast %289 : vector<1x32x32xbf16> to vector<32x32xbf16>
    %cst_129 = arith.constant dense<0.000000e+00> : vector<16x32xf32>
    %291 = tpu.matmul %288, %290, %cst_129 {dimension_numbers = #tpu.dot_dimension_numbers<[1], [0], [0], [1], [0, 0, 1, 1], [], []>} : vector<16x32xbf16>, vector<32x32xbf16>, vector<16x32xf32> -> vector<16x32xf32>
    %c1_130 = arith.constant 1 : index
    %c0_131 = arith.constant 0 : index
    %c0_132 = arith.constant 0 : index
    %292 = vector.load %arg14[%c1_130, %c0_131, %c0_132] : memref<2x1x32xf32, #tpu.memory_space<vmem>>, vector<1x1x32xf32>
    %293 = vector.shape_cast %292 : vector<1x1x32xf32> to vector<1x32xf32>
    %294 = vector.broadcast %293 : vector<1x32xf32> to vector<16x32xf32>
    %295 = arith.addf %291, %294 : vector<16x32xf32>
    %296 = arith.addf %295, %216 : vector<16x32xf32>
    %c1_133 = arith.constant 1 : index
    %c0_134 = arith.constant 0 : index
    %c0_135 = arith.constant 0 : index
    %297 = vector.load %arg15[%c1_133, %c0_134, %c0_135] : memref<2x1x32xf32, #tpu.memory_space<vmem>>, vector<1x1x32xf32>
    %298 = vector.shape_cast %297 : vector<1x1x32xf32> to vector<1x32xf32>
    %c1_136 = arith.constant 1 : index
    %c0_137 = arith.constant 0 : index
    %c0_138 = arith.constant 0 : index
    %299 = vector.load %arg16[%c1_136, %c0_137, %c0_138] : memref<2x1x32xf32, #tpu.memory_space<vmem>>, vector<1x1x32xf32>
    %300 = vector.shape_cast %299 : vector<1x1x32xf32> to vector<1x32xf32>
    %cst_139 = arith.constant dense<0.000000e+00> : vector<16xf32>
    %301 = vector.multi_reduction <add>, %296, %cst_139 [1] : vector<16x32xf32> to vector<16xf32>
    %302 = vector.shape_cast %301 : vector<16xf32> to vector<16x1xf32>
    %cst_140 = arith.constant 3.200000e+01 : f32
    %303 = vector.broadcast %cst_140 : f32 to vector<16x1xf32>
    %304 = arith.divf %302, %303 : vector<16x1xf32>
    %305 = arith.mulf %296, %296 : vector<16x32xf32>
    %cst_141 = arith.constant dense<0.000000e+00> : vector<16xf32>
    %306 = vector.multi_reduction <add>, %305, %cst_141 [1] : vector<16x32xf32> to vector<16xf32>
    %307 = vector.shape_cast %306 : vector<16xf32> to vector<16x1xf32>
    %cst_142 = arith.constant 3.200000e+01 : f32
    %308 = vector.broadcast %cst_142 : f32 to vector<16x1xf32>
    %309 = arith.divf %307, %308 : vector<16x1xf32>
    %310 = arith.mulf %304, %304 : vector<16x1xf32>
    %311 = arith.subf %309, %310 : vector<16x1xf32>
    %cst_143 = arith.constant 0.000000e+00 : f32
    %312 = vector.broadcast %cst_143 : f32 to vector<16x1xf32>
    %313 = arith.maximumf %311, %312 : vector<16x1xf32>
    %314 = vector.broadcast %304 : vector<16x1xf32> to vector<16x32xf32>
    %315 = arith.subf %296, %314 : vector<16x32xf32>
    %cst_144 = arith.constant 9.99999996E-13 : f32
    %316 = vector.broadcast %cst_144 : f32 to vector<16x1xf32>
    %317 = arith.addf %313, %316 : vector<16x1xf32>
    %318 = math.rsqrt %317 : vector<16x1xf32>
    %319 = vector.broadcast %318 : vector<16x1xf32> to vector<16x32xf32>
    %320 = arith.mulf %315, %319 : vector<16x32xf32>
    %321 = vector.broadcast %298 : vector<1x32xf32> to vector<16x32xf32>
    %322 = arith.mulf %320, %321 : vector<16x32xf32>
    %323 = vector.broadcast %300 : vector<1x32xf32> to vector<16x32xf32>
    %324 = arith.addf %322, %323 : vector<16x32xf32>
    %325 = arith.truncf %324 : vector<16x32xf32> to vector<16x32xbf16>
    %c1_145 = arith.constant 1 : index
    %c0_146 = arith.constant 0 : index
    %c0_147 = arith.constant 0 : index
    %326 = vector.load %arg17[%c1_145, %c0_146, %c0_147] : memref<2x32x128xbf16, #tpu.memory_space<vmem>>, vector<1x32x128xbf16>
    %327 = vector.shape_cast %326 : vector<1x32x128xbf16> to vector<32x128xbf16>
    %cst_148 = arith.constant dense<0.000000e+00> : vector<16x128xf32>
    %328 = tpu.matmul %325, %327, %cst_148 {dimension_numbers = #tpu.dot_dimension_numbers<[1], [0], [0], [1], [0, 0, 1, 1], [], []>} : vector<16x32xbf16>, vector<32x128xbf16>, vector<16x128xf32> -> vector<16x128xf32>
    %c1_149 = arith.constant 1 : index
    %c0_150 = arith.constant 0 : index
    %c0_151 = arith.constant 0 : index
    %329 = vector.load %arg18[%c1_149, %c0_150, %c0_151] : memref<2x1x128xf32, #tpu.memory_space<vmem>>, vector<1x1x128xf32>
    %330 = vector.shape_cast %329 : vector<1x1x128xf32> to vector<1x128xf32>
    %331 = vector.broadcast %330 : vector<1x128xf32> to vector<16x128xf32>
    %332 = arith.addf %328, %331 : vector<16x128xf32>
    %cst_152 = arith.constant 5.000000e-01 : f32
    %333 = vector.broadcast %cst_152 : f32 to vector<16x128xf32>
    %334 = arith.mulf %332, %333 : vector<16x128xf32>
    %cst_153 = arith.constant 0.707106769 : f32
    %335 = vector.broadcast %cst_153 : f32 to vector<16x128xf32>
    %336 = arith.mulf %332, %335 : vector<16x128xf32>
    %337 = math.erf %336 : vector<16x128xf32>
    %cst_154 = arith.constant 1.000000e+00 : f32
    %338 = vector.broadcast %cst_154 : f32 to vector<16x128xf32>
    %339 = arith.addf %338, %337 : vector<16x128xf32>
    %340 = arith.mulf %334, %339 : vector<16x128xf32>
    %341 = arith.truncf %340 : vector<16x128xf32> to vector<16x128xbf16>
    %c1_155 = arith.constant 1 : index
    %c0_156 = arith.constant 0 : index
    %c0_157 = arith.constant 0 : index
    %342 = vector.load %arg19[%c1_155, %c0_156, %c0_157] : memref<2x128x32xbf16, #tpu.memory_space<vmem>>, vector<1x128x32xbf16>
    %343 = vector.shape_cast %342 : vector<1x128x32xbf16> to vector<128x32xbf16>
    %cst_158 = arith.constant dense<0.000000e+00> : vector<16x32xf32>
    %344 = tpu.matmul %341, %343, %cst_158 {dimension_numbers = #tpu.dot_dimension_numbers<[1], [0], [0], [1], [0, 0, 1, 1], [], []>} : vector<16x128xbf16>, vector<128x32xbf16>, vector<16x32xf32> -> vector<16x32xf32>
    %c1_159 = arith.constant 1 : index
    %c0_160 = arith.constant 0 : index
    %c0_161 = arith.constant 0 : index
    %345 = vector.load %arg20[%c1_159, %c0_160, %c0_161] : memref<2x1x32xf32, #tpu.memory_space<vmem>>, vector<1x1x32xf32>
    %346 = vector.shape_cast %345 : vector<1x1x32xf32> to vector<1x32xf32>
    %347 = vector.broadcast %346 : vector<1x32xf32> to vector<16x32xf32>
    %348 = arith.addf %344, %347 : vector<16x32xf32>
    %349 = arith.addf %348, %324 : vector<16x32xf32>
    %c1_162 = arith.constant 1 : index
    %c0_163 = arith.constant 0 : index
    %c0_164 = arith.constant 0 : index
    %350 = vector.load %arg21[%c1_162, %c0_163, %c0_164] : memref<2x1x32xf32, #tpu.memory_space<vmem>>, vector<1x1x32xf32>
    %351 = vector.shape_cast %350 : vector<1x1x32xf32> to vector<1x32xf32>
    %c1_165 = arith.constant 1 : index
    %c0_166 = arith.constant 0 : index
    %c0_167 = arith.constant 0 : index
    %352 = vector.load %arg22[%c1_165, %c0_166, %c0_167] : memref<2x1x32xf32, #tpu.memory_space<vmem>>, vector<1x1x32xf32>
    %353 = vector.shape_cast %352 : vector<1x1x32xf32> to vector<1x32xf32>
    %cst_168 = arith.constant dense<0.000000e+00> : vector<16xf32>
    %354 = vector.multi_reduction <add>, %349, %cst_168 [1] : vector<16x32xf32> to vector<16xf32>
    %355 = vector.shape_cast %354 : vector<16xf32> to vector<16x1xf32>
    %cst_169 = arith.constant 3.200000e+01 : f32
    %356 = vector.broadcast %cst_169 : f32 to vector<16x1xf32>
    %357 = arith.divf %355, %356 : vector<16x1xf32>
    %358 = arith.mulf %349, %349 : vector<16x32xf32>
    %cst_170 = arith.constant dense<0.000000e+00> : vector<16xf32>
    %359 = vector.multi_reduction <add>, %358, %cst_170 [1] : vector<16x32xf32> to vector<16xf32>
    %360 = vector.shape_cast %359 : vector<16xf32> to vector<16x1xf32>
    %cst_171 = arith.constant 3.200000e+01 : f32
    %361 = vector.broadcast %cst_171 : f32 to vector<16x1xf32>
    %362 = arith.divf %360, %361 : vector<16x1xf32>
    %363 = arith.mulf %357, %357 : vector<16x1xf32>
    %364 = arith.subf %362, %363 : vector<16x1xf32>
    %cst_172 = arith.constant 0.000000e+00 : f32
    %365 = vector.broadcast %cst_172 : f32 to vector<16x1xf32>
    %366 = arith.maximumf %364, %365 : vector<16x1xf32>
    %367 = vector.broadcast %357 : vector<16x1xf32> to vector<16x32xf32>
    %368 = arith.subf %349, %367 : vector<16x32xf32>
    %cst_173 = arith.constant 9.99999996E-13 : f32
    %369 = vector.broadcast %cst_173 : f32 to vector<16x1xf32>
    %370 = arith.addf %366, %369 : vector<16x1xf32>
    %371 = math.rsqrt %370 : vector<16x1xf32>
    %372 = vector.broadcast %371 : vector<16x1xf32> to vector<16x32xf32>
    %373 = arith.mulf %368, %372 : vector<16x32xf32>
    %374 = vector.broadcast %351 : vector<1x32xf32> to vector<16x32xf32>
    %375 = arith.mulf %373, %374 : vector<16x32xf32>
    %376 = vector.broadcast %353 : vector<1x32xf32> to vector<16x32xf32>
    %377 = arith.addf %375, %376 : vector<16x32xf32>
    %378 = vector.shape_cast %377 : vector<16x32xf32> to vector<2x8x32xf32>
    %c0_174 = arith.constant 0 : index
    %c0_175 = arith.constant 0 : index
    %c0_176 = arith.constant 0 : index
    %379 = vector.load %arg23[%c0_174, %c0_175, %c0_176] : memref<2x8x32xf32, #tpu.memory_space<vmem>>, vector<2x8x32xf32>
    tpu.vector_store %arg23[%c0_174, %c0_175, %c0_176], %378 {strides = array<i32>} : memref<2x8x32xf32, #tpu.memory_space<vmem>>, vector<2x8x32xf32>,
    return
  }
  func.func @transform_0(%arg0: i32) -> (i32, i32, i32) {
    %c0_i32 = arith.constant 0 : i32
    %c0_i32_0 = arith.constant 0 : i32
    %c0_i32_1 = arith.constant 0 : i32
    return %arg0, %c0_i32, %c0_i32_0 : i32, i32, i32
  }
  func.func @transform_1(%arg0: i32) -> (i32, i32, i32) {
    %c0_i32 = arith.constant 0 : i32
    %c0_i32_0 = arith.constant 0 : i32
    %c0_i32_1 = arith.constant 0 : i32
    return %arg0, %c0_i32, %c0_i32_0 : i32, i32, i32
  }
  func.func @transform_2(%arg0: i32) -> (i32, i32) {
    %c0_i32 = arith.constant 0 : i32
    %c0_i32_0 = arith.constant 0 : i32
    %c0_i32_1 = arith.constant 0 : i32
    return %c0_i32, %c0_i32_0 : i32, i32
  }
  func.func @transform_3(%arg0: i32) -> (i32, i32) {
    %c0_i32 = arith.constant 0 : i32
    %c0_i32_0 = arith.constant 0 : i32
    %c0_i32_1 = arith.constant 0 : i32
    return %c0_i32, %c0_i32_0 : i32, i32
  }
  func.func @transform_4(%arg0: i32) -> (i32, i32) {
    %c0_i32 = arith.constant 0 : i32
    %c0_i32_0 = arith.constant 0 : i32
    %c0_i32_1 = arith.constant 0 : i32
    return %c0_i32, %c0_i32_0 : i32, i32
  }
  func.func @transform_5(%arg0: i32) -> (i32, i32) {
    %c0_i32 = arith.constant 0 : i32
    %c0_i32_0 = arith.constant 0 : i32
    %c0_i32_1 = arith.constant 0 : i32
    return %c0_i32, %c0_i32_0 : i32, i32
  }
  func.func @transform_6(%arg0: i32) -> (i32, i32, i32) {
    %c0_i32 = arith.constant 0 : i32
    %c0_i32_0 = arith.constant 0 : i32
    %c0_i32_1 = arith.constant 0 : i32
    %c0_i32_2 = arith.constant 0 : i32
    return %c0_i32, %c0_i32_0, %c0_i32_1 : i32, i32, i32
  }
  func.func @transform_7(%arg0: i32) -> (i32, i32, i32) {
    %c0_i32 = arith.constant 0 : i32
    %c0_i32_0 = arith.constant 0 : i32
    %c0_i32_1 = arith.constant 0 : i32
    %c0_i32_2 = arith.constant 0 : i32
    return %c0_i32, %c0_i32_0, %c0_i32_1 : i32, i32, i32
  }
  func.func @transform_8(%arg0: i32) -> (i32, i32, i32) {
    %c0_i32 = arith.constant 0 : i32
    %c0_i32_0 = arith.constant 0 : i32
    %c0_i32_1 = arith.constant 0 : i32
    %c0_i32_2 = arith.constant 0 : i32
    return %c0_i32, %c0_i32_0, %c0_i32_1 : i32, i32, i32
  }
  func.func @transform_9(%arg0: i32) -> (i32, i32, i32) {
    %c0_i32 = arith.constant 0 : i32
    %c0_i32_0 = arith.constant 0 : i32
    %c0_i32_1 = arith.constant 0 : i32
    %c0_i32_2 = arith.constant 0 : i32
    return %c0_i32, %c0_i32_0, %c0_i32_1 : i32, i32, i32
  }
  func.func @transform_10(%arg0: i32) -> (i32, i32, i32) {
    %c0_i32 = arith.constant 0 : i32
    %c0_i32_0 = arith.constant 0 : i32
    %c0_i32_1 = arith.constant 0 : i32
    %c0_i32_2 = arith.constant 0 : i32
    return %c0_i32, %c0_i32_0, %c0_i32_1 : i32, i32, i32
  }
  func.func @transform_11(%arg0: i32) -> (i32, i32, i32) {
    %c0_i32 = arith.constant 0 : i32
    %c0_i32_0 = arith.constant 0 : i32
    %c0_i32_1 = arith.constant 0 : i32
    %c0_i32_2 = arith.constant 0 : i32
    return %c0_i32, %c0_i32_0, %c0_i32_1 : i32, i32, i32
  }
  func.func @transform_12(%arg0: i32) -> (i32, i32, i32) {
    %c0_i32 = arith.constant 0 : i32
    %c0_i32_0 = arith.constant 0 : i32
    %c0_i32_1 = arith.constant 0 : i32
    %c0_i32_2 = arith.constant 0 : i32
    return %c0_i32, %c0_i32_0, %c0_i32_1 : i32, i32, i32
  }
  func.func @transform_13(%arg0: i32) -> (i32, i32, i32) {
    %c0_i32 = arith.constant 0 : i32
    %c0_i32_0 = arith.constant 0 : i32
    %c0_i32_1 = arith.constant 0 : i32
    %c0_i32_2 = arith.constant 0 : i32
    return %c0_i32, %c0_i32_0, %c0_i32_1 : i32, i32, i32
  }
  func.func @transform_14(%arg0: i32) -> (i32, i32, i32) {
    %c0_i32 = arith.constant 0 : i32
    %c0_i32_0 = arith.constant 0 : i32
    %c0_i32_1 = arith.constant 0 : i32
    %c0_i32_2 = arith.constant 0 : i32
    return %c0_i32, %c0_i32_0, %c0_i32_1 : i32, i32, i32
  }
  func.func @transform_15(%arg0: i32) -> (i32, i32, i32) {
    %c0_i32 = arith.constant 0 : i32
    %c0_i32_0 = arith.constant 0 : i32
    %c0_i32_1 = arith.constant 0 : i32
    %c0_i32_2 = arith.constant 0 : i32
    return %c0_i32, %c0_i32_0, %c0_i32_1 : i32, i32, i32
  }
  func.func @transform_16(%arg0: i32) -> (i32, i32, i32) {
    %c0_i32 = arith.constant 0 : i32
    %c0_i32_0 = arith.constant 0 : i32
    %c0_i32_1 = arith.constant 0 : i32
    %c0_i32_2 = arith.constant 0 : i32
    return %c0_i32, %c0_i32_0, %c0_i32_1 : i32, i32, i32
  }
  func.func @transform_17(%arg0: i32) -> (i32, i32, i32) {
    %c0_i32 = arith.constant 0 : i32
    %c0_i32_0 = arith.constant 0 : i32
    %c0_i32_1 = arith.constant 0 : i32
    %c0_i32_2 = arith.constant 0 : i32
    return %c0_i32, %c0_i32_0, %c0_i32_1 : i32, i32, i32
  }
  func.func @transform_18(%arg0: i32) -> (i32, i32, i32) {
    %c0_i32 = arith.constant 0 : i32
    %c0_i32_0 = arith.constant 0 : i32
    %c0_i32_1 = arith.constant 0 : i32
    %c0_i32_2 = arith.constant 0 : i32
    return %c0_i32, %c0_i32_0, %c0_i32_1 : i32, i32, i32
  }
  func.func @transform_19(%arg0: i32) -> (i32, i32, i32) {
    %c0_i32 = arith.constant 0 : i32
    %c0_i32_0 = arith.constant 0 : i32
    %c0_i32_1 = arith.constant 0 : i32
    %c0_i32_2 = arith.constant 0 : i32
    return %c0_i32, %c0_i32_0, %c0_i32_1 : i32, i32, i32
  }
  func.func @transform_20(%arg0: i32) -> (i32, i32, i32) {
    %c0_i32 = arith.constant 0 : i32
    %c0_i32_0 = arith.constant 0 : i32
    %c0_i32_1 = arith.constant 0 : i32
    %c0_i32_2 = arith.constant 0 : i32
    return %c0_i32, %c0_i32_0, %c0_i32_1 : i32, i32, i32
  }
  func.func @transform_21(%arg0: i32) -> (i32, i32, i32) {
    %c0_i32 = arith.constant 0 : i32
    %c0_i32_0 = arith.constant 0 : i32
    %c0_i32_1 = arith.constant 0 : i32
    %c0_i32_2 = arith.constant 0 : i32
    return %c0_i32, %c0_i32_0, %c0_i32_1 : i32, i32, i32
  }
  func.func @transform_22(%arg0: i32) -> (i32, i32, i32) {
    %c0_i32 = arith.constant 0 : i32
    %c0_i32_0 = arith.constant 0 : i32
    %c0_i32_1 = arith.constant 0 : i32
    return %arg0, %c0_i32, %c0_i32_0 : i32, i32, i32
  }
}

</mosaic_0001>

<bundles_post_ra>
// kernel: sasrec_forward.1
= control target key start
LH: loop header
LB: loop body
LE: loop exit
PB: predicated region body
PF: predicated region fallthrough
CT: control target
= control target key end

     0   :  { %s2713_s0 = inlined_call_operand.vmem [shape: s32[2,8,1], index: 0, kind: input, shape index: {}]   ;;  %s2714_s1 = inlined_call_operand.vmem [shape: f32[2,1,8], index: 1, kind: input, shape index: {}]   ;;  %s2715_s2 = inlined_call_operand.vmem [shape: bf16[64,32], index: 2, kind: input, shape index: {}]   ;;  %s2716_s3 = inlined_call_operand.vmem [shape: f32[8,32], index: 3, kind: input, shape index: {}]   ;;  %s2717_s4 = inlined_call_operand.vmem [shape: f32[1,32], index: 4, kind: input, shape index: {}]   ;;  %s2718_s5 = inlined_call_operand.vmem [shape: f32[1,32], index: 5, kind: input, shape index: {}]   ;;  %s2719_s6 = inlined_call_operand.vmem [shape: bf16[2,32,32], index: 6, kind: input, shape index: {}]   ;;  %s2720_s7 = inlined_call_operand.vmem [shape: f32[2,1,32], index: 7, kind: input, shape index: {}]   ;;  %s2721_s8 = inlined_call_operand.vmem [shape: bf16[2,32,32], index: 8, kind: input, shape index: {}]   ;;  %s2722_s9 = inlined_call_operand.vmem [shape: f32[2,1,32], index: 9, kind: input, shape index: {}]   ;;  %s2723_s10 = inlined_call_operand.vmem [shape: bf16[2,32,32], index: 10, kind: input, shape index: {}]   ;;  %s2724_s11 = inlined_call_operand.vmem [shape: f32[2,1,32], index: 11, kind: input, shape index: {}]   ;;  %s2725_s12 = inlined_call_operand.vmem [shape: bf16[2,32,32], index: 12, kind: input, shape index: {}]   ;;  %s2726_s13 = inlined_call_operand.vmem [shape: f32[2,1,32], index: 13, kind: input, shape index: {}]   ;;  %s2727_s14 = inlined_call_operand.vmem [shape: f32[2,1,32], index: 14, kind: input, shape index: {}]   ;;  %s2728_s15 = inlined_call_operand.vmem [shape: f32[2,1,32], index: 15, kind: input, shape index: {}]   ;;  %s2729_s16 = inlined_call_operand.vmem [shape: bf16[2,32,128], index: 16, kind: input, shape index: {}]   ;;  %s2730_s17 = inlined_call_operand.vmem [shape: f32[2,1,128], index: 17, kind: input, shape index: {}]   ;;  %s2731_s18 = inlined_call_operand.vmem [shape: bf16[2,128,32], index: 18, kind: input, shape index: {}]   ;;  %s2732_s19 = inlined_call_operand.vmem [shape: f32[2,1,32], index: 19, kind: input, shape index: {}]   ;;  %s2733_s20 = inlined_call_operand.vmem [shape: f32[2,1,32], index: 20, kind: input, shape index: {}]   ;;  %s2734_s21 = inlined_call_operand.vmem [shape: f32[2,1,32], index: 21, kind: input, shape index: {}]   ;;  %s2735_s22 = inlined_call_operand.hbm [shape: f32[2,8,32], index: 22, kind: output, shape index: {}]  }
   0x1   :  { %2740 = sst [smem:[#allocation5_spill]] %s2713_s0 }
   0x2   :  { %2741 = sst [smem:[#allocation6_spill]] %s2714_s1 }
   0x3   :  { %2742 = sst [smem:[#allocation7_spill]] %s2715_s2 }
   0x4   :  { %2743 = sst [smem:[#allocation8_spill]] %s2716_s3 }
   0x5   :  { %2744 = sst [smem:[#allocation9_spill]] %s2717_s4 }
   0x6   :  { %2745 = sst [smem:[#allocation10_spill]] %s2718_s5 }
   0x7   :  { %2746 = sst [smem:[#allocation11_spill]] %s2719_s6 }
   0x8   :  { %s2747_s29 = sld [smem:[#allocation5_spill]]  ;;  %v2142_v1 = vmov 0  }
   0x9   :  { %2019 = vset.pattern.permute.xlu0 %v2142_v1 }
   0xe   :  { %v73_v0 = vld [vmem:[%s2747_s29] sm:$0xff]  ;;  %v74_v2 = vld [vmem:[%s2747_s29 + $0x8] sm:$0xff] }
   0xf   :  { %78 = vperm.xlu0 %2019, %v73_v0  }
  0x17   :  { %81 = vperm.xlu0 %2019, %v74_v2  }
  0x18   :  { %27 = vsyncpa [#allocation3], 0  ;;  %s2748_s1 = sld [smem:[#allocation7_spill]]  ;;  %v75_v7 = vlaneseq  ;;  %v2143_v10 = vmov 0.0   ;;  %vm128_vm2 = vcmask 523264   ;;  %vm151_vm3 = vcmask 261120  }
  0x19   :  { %s2749_s28 = sld [smem:[#allocation8_spill]]  ;;  %v2144_v30 = vmov 32.0   ;;  %v1978_v43 = vld [vmem:[%s2721_s8 + $0x8] sm:$0xff]  ;;  %v1977_v46 = vld [vmem:[%s2721_s8] sm:$0xff]  ;;  %vm350_vm11 = vcmask 130048   ;;  %s2145_s25 = smov 112  }
  0x1a   :  { %v2284_v8 = vand.u32 127, %v75_v7  ;;  %2054 = vrcp.f32 %v2144_v30  ;;  %s2750_s4 = sld [smem:[#allocation11_spill]]  ;;  %302 = vmatpush.bf16.msra.mxu3 %v1978_v43  ;;  %v1980_v55 = vld [vmem:[%s2723_s10 + $0x8] sm:$0xff]  ;;  %v1979_v57 = vld [vmem:[%s2723_s10] sm:$0xff]  ;;  %vm417_vm12 = vcmask 1043456   ;;  %vm389_vm14 = vcmask 64512  }
  0x1b   :  { %s2751_s29 = sld [smem:[#allocation9_spill]] }
  0x1c   :  { %s2752_s23 = sld [smem:[#allocation10_spill]] }
  0x1e   :  { %v1974_v3 = vld [vmem:[%s2748_s1 + $0x18] sm:$0xff]  ;;  %v1973_v4 = vld [vmem:[%s2748_s1 + $0x10] sm:$0xff]  ;;  %v1972_v5 = vld [vmem:[%s2748_s1 + $0x8] sm:$0xff]  ;;  %303 = vmatpush.bf16.msra.mxu3 %v1977_v46 }
  0x1f   :  { %136 = vmatpush.bf16.msra.mxu0 %v1974_v3  ;;  %v1971_v6 = vld [vmem:[%s2748_s1] sm:$0xff]  ;;  %s2146_s1 = smov 16  }
  0x20   :  { %v146_v19 = vld [vmem:[%s2749_s28] sm:$0xff]  ;;  %v2055_v31 = vpop.eup %2054  ;;  %v1976_v42 = vld [vmem:[%s2750_s4 + $0x8] sm:$0xff]  ;;  %s2753_s28 = sld [smem:[#allocation6_spill]] }
  0x21   :  { %v159_v32 = vmul.f32 32.0, %v2055_v31  ;;  %vm163_vm4 = vweird.f32 %v2055_v31  ;;  %268 = vmatpush.bf16.msra.mxu1 %v1976_v42  ;;  %v1975_v45 = vld [vmem:[%s2750_s4] sm:$0xff] }
  0x22   :  { %336 = vmatpush.bf16.msrb.mxu3 %v1980_v55  ;;  %v2036_v46 = vld [vmem:[%s2724_s11] ss:$0 sm:$0xff] }
  0x23   :  { %137 = vmatpush.bf16.msra.mxu0 %v1973_v4  ;;  %v160_v33 = vsub.f32 1.0, %v159_v32 }
  0x25   :  { %v161_v34 = vmul.f32 %v2055_v31, %v160_v33  ;;  %269 = vmatpush.bf16.msra.mxu1 %v1975_v45 }
  0x26   :  { %337 = vmatpush.bf16.msrb.mxu3 %v1979_v57  ;;  %v220_v57 = vshrl.u32 %v75_v7, 7 }
  0x27   :  { %138 = vmatpush.bf16.msra.mxu0 %v1972_v5  ;;  %v162_v35 = vadd.f32 %v2055_v31, %v161_v34 }
  0x28   :  { %vm221_vm13 = vcmp.ge.s32.totalorder %v220_v57, %v2284_v8 }
  0x29   :  { %v2307_v36 = vsel %vm163_vm4, %v2055_v31, %v162_v35 }
  0x2b   :  { %139 = vmatpush.bf16.msra.mxu0 %v1971_v6 }
  0x81   :  { %v79_v9 = vpop.permute.xlu0 %78 }
  0x82   :  { %vm83_vm0 = vcmp.eq.s32.totalorder %v79_v9, %v2284_v8 }
  0x83   :  { %v1731_v11 = vsel %vm83_vm0, 1.0, %v2143_v10 }
  0x84   :  { %v89_v13 = vpack.c.bf16 %v1731_v11, %v1731_v11 }
  0x86   :  { %v101_v16 = vunpack.c.l.b16 %v89_v13 }
  0x89   :  { %v82_v12 = vpop.permute.xlu0 %81 }
  0x8a   :  { %vm84_vm1 = vcmp.eq.s32.totalorder %v82_v12, %v2284_v8  ;;  %v2032_v12 = vld [vmem:[%s2751_s29] ss:$0 sm:$0xff] }
  0x8b   :  { %v1732_v14 = vsel %vm84_vm1, 1.0, %v2143_v10 }
  0x8c   :  { %v90_v15 = vpack.c.bf16 %v1732_v14, %v1732_v14 }
  0x8e   :  { %v102_v17 = vunpack.c.l.b16 %v90_v15 }
  0x90   :  { %v103_v18 = vpack.c.b16 %v102_v17, %v101_v16 }
  0x92   :  { %1749 = vmatmul.msk.bf16.vlgmr.msra.gmra.mxu0 %vm128_vm2, %v103_v18  ;;  %v2033_v18 = vld [vmem:[%s2752_s23] ss:$0 sm:$0xff] }
 0x10f   :  { %v141_v20 = vpop.f32.mrf.mxu0 }
 0x110   :  { %v2293_v21 = vadd.f32 %v146_v19, %v141_v20 }
 0x112   :  { %v152_v22 = vsel %vm151_vm3, %v2293_v21, 0.0  ;;  %v167_v23 = vmul.f32 %v2293_v21, %v2293_v21 }
 0x113   :  { %153 = vadd.xlane.f32.xlu1 %v152_v22 }
 0x114   :  { %v169_v24 = vsel %vm151_vm3, %v167_v23, 0.0  ;;  %v2034_v23 = vld [vmem:[%s2720_s7] ss:$0 sm:$0xff] }
 0x115   :  { %170 = vadd.xlane.f32.xlu2 %v169_v24 }
 0x117   :  { %v143_v25 = vpop.f32.mrf.mxu0 }
 0x118   :  { %v2300_v26 = vadd.f32 %v146_v19, %v143_v25 }
 0x11a   :  { %v155_v27 = vsel %vm151_vm3, %v2300_v26, 0.0  ;;  %v168_v28 = vmul.f32 %v2300_v26, %v2300_v26 }
 0x11b   :  { %156 = vadd.xlane.f32.xlu1 %v155_v27  ;;  %v2035_v27 = vld [vmem:[%s2722_s9] ss:$0 sm:$0xff] }
 0x11c   :  { %v172_v29 = vsel %vm151_vm3, %v168_v28, 0.0 }
 0x11d   :  { %173 = vadd.xlane.f32.xlu2 %v172_v29 }
 0x186   :  { %v154_v37 = vpop.xlane.xlu1 %153 }
 0x187   :  { %v165_v38 = vmul.f32 %v2307_v36, %v154_v37 }
 0x188   :  { %v171_v39 = vpop.xlane.xlu2 %170 }
 0x189   :  { %v177_v40 = vmul.f32 %v165_v38, %v165_v38  ;;  %v175_v41 = vmul.f32 %v171_v39, %v2307_v36  ;;  %v183_v6 = vsub.f32 %v2293_v21, %v165_v38 }
 0x18b   :  { %v179_v44 = vsub.f32 %v175_v41, %v177_v40 }
 0x18d   :  { %v181_v47 = vmax.f32 %v179_v44, 0.0 }
 0x18e   :  { %v157_v48 = vpop.xlane.xlu1 %156 }
 0x18f   :  { %v185_v49 = vadd.f32 1e-12, %v181_v47  ;;  %v166_v50 = vmul.f32 %v2307_v36, %v157_v48 }
 0x190   :  { %v174_v51 = vpop.xlane.xlu2 %173 }
 0x191   :  { %2056 = vrsqrt.f32 %v185_v49  ;;  %v178_v52 = vmul.f32 %v166_v50, %v166_v50  ;;  %v176_v53 = vmul.f32 %v174_v51, %v2307_v36  ;;  %vm193_vm6 = vweird.f32 %v185_v49 }
 0x192   :  { %v184_v14 = vsub.f32 %v2300_v26, %v166_v50 }
 0x193   :  { %v180_v54 = vsub.f32 %v176_v53, %v178_v52 }
 0x195   :  { %v182_v56 = vmax.f32 %v180_v54, 0.0 }
 0x197   :  { %v2057_v58 = vpop.eup %2056  ;;  %v186_v60 = vadd.f32 1e-12, %v182_v56 }
 0x198   :  { %v188_v59 = vmul.f32 %v2057_v58, %v185_v49  ;;  %vm194_vm5 = vweird.f32 %v2057_v58 }
 0x199   :  { %2058 = vrsqrt.f32 %v186_v60  ;;  %vm195_vm7 = vmor %vm193_vm6, %vm194_vm5  ;;  %vm203_vm9 = vweird.f32 %v186_v60 }
 0x19a   :  { %v189_v61 = vmul.f32 %v2057_v58, %v188_v59 }
 0x19c   :  { %v190_v62 = vmul.f32 0.5, %v189_v61 }
 0x19e   :  { %v191_v63 = vsub.f32 1.5, %v190_v62 }
 0x19f   :  { %v2059_v0 = vpop.eup %2058 }
 0x1a0   :  { %v192_v1 = vmul.f32 %v2057_v58, %v191_v63  ;;  %v198_v2 = vmul.f32 %v2059_v0, %v186_v60  ;;  %vm204_vm8 = vweird.f32 %v2059_v0  ;;  %v1750_v60 = vsel %vm221_vm13, 1.0, %v2143_v10 }
 0x1a1   :  { %vm205_vm10 = vmor %vm203_vm9, %vm204_vm8 }
 0x1a2   :  { %v199_v3 = vmul.f32 %v2059_v0, %v198_v2  ;;  %v196_v5 = vsel %vm195_vm7, %v2057_v58, %v192_v1  ;;  %v2030_v58 = vld [vmem:[%s2753_s28] ss:$0 sm:$0xff]  ;;  %v2031_v2 = vld [vmem:[%s2753_s28 + $0x1] ss:$0 sm:$0xff] }
 0x1a3   :  { %v207_v11 = vmul.f32 %v196_v5, %v183_v6  ;;  %v232_v62 = vmul.f32 %v2030_v58, %v1750_v60  ;;  %v233_v5 = vmul.f32 %v2031_v2, %v1750_v60 }
 0x1a4   :  { %v200_v4 = vmul.f32 0.5, %v199_v3 }
 0x1a5   :  { %v212_v17 = vmul.f32 %v2032_v12, %v207_v11  ;;  %v234_v63 = vsub.f32 1.0, %v232_v62 }
 0x1a6   :  { %v201_v9 = vsub.f32 1.5, %v200_v4 }
 0x1a7   :  { %v2339_v20 = vadd.f32 %v2033_v18, %v212_v17  ;;  %v2382_v8 = vmul.f32 -10000.0, %v234_v63 }
 0x1a8   :  { %v202_v13 = vmul.f32 %v2059_v0, %v201_v9  ;;  %v235_v9 = vsub.f32 1.0, %v233_v5 }
 0x1aa   :  { %v206_v15 = vsel %vm205_vm10, %v2059_v0, %v202_v13 }
 0x1ab   :  { %v208_v16 = vmul.f32 %v206_v15, %v184_v14 }
 0x1ad   :  { %v213_v19 = vmul.f32 %v2032_v12, %v208_v16  ;;  %v2390_v12 = vmul.f32 -10000.0, %v235_v9 }
 0x1af   :  { %v2341_v21 = vadd.f32 %v2033_v18, %v213_v19 }
 0x1b1   :  { %v238_v22 = vpack.c.bf16 %v2341_v21, %v2339_v20 }
 0x1b3   :  { %1759 = vmatmul.msk.bf16.vlgmr.msra.gmra.mxu1 %vm151_vm3, %v238_v22  ;;  %1768 = vmatmul.msk.bf16.vlgmr.msra.gmra.mxu3 %vm151_vm3, %v238_v22 }
 0x1c3   :  { %1777 = vmatmul.msk.bf16.vlgmr.msrb.gmra.mxu3 %vm151_vm3, %v238_v22 }
 0x230   :  { %v271_v24 = vpop.f32.mrf.mxu1 }
 0x231   :  { %v272_v25 = vadd.f32 %v2034_v23, %v271_v24 }
 0x233   :  { %v344_v26 = vpack.c.bf16 %v272_v25, %v272_v25 }
 0x235   :  { %v454_v28 = vunpack.c.l.b16 %v344_v26 }
 0x236   :  { %v305_v29 = vpop.f32.mrf.mxu3 }
 0x237   :  { %v455_v30 = vpack.c.b16 %v454_v28, %v454_v28  ;;  %v306_v31 = vadd.f32 %v2035_v27, %v305_v29 }
 0x238   :  { %v273_v32 = vpop.f32.mrf.mxu1 }
 0x239   :  { %v346_v33 = vpack.c.bf16 %v306_v31, %v306_v31  ;;  %v274_v34 = vadd.f32 %v2034_v23, %v273_v32  ;;  %456 = vrot.lane.b32.xlu2 %v455_v30, %s2145_s25 }
 0x23b   :  { %v459_v35 = vunpack.c.l.b16 %v346_v33  ;;  %v355_v37 = vsel %vm350_vm11, %v346_v33, 0  ;;  %v345_v39 = vpack.c.bf16 %v274_v34, %v274_v34 }
 0x23c   :  { %364 = vmatpush.bf16.xpose.msrb.mxu1 %v355_v37 }
 0x23d   :  { %v460_v38 = vpack.c.b16 %v459_v35, %v459_v35  ;;  %v483_v42 = vunpack.c.l.b16 %v345_v39 }
 0x23e   :  { %v307_v40 = vpop.f32.mrf.mxu3 }
 0x23f   :  { %v308_v41 = vadd.f32 %v2035_v27, %v307_v40  ;;  %461 = vrot.lane.b32.xlu0 %v460_v38, %s2145_s25  ;;  %v484_v47 = vpack.c.b16 %v483_v42, %v483_v42 }
 0x241   :  { %v347_v43 = vpack.c.bf16 %v308_v41, %v308_v41 }
 0x243   :  { %v488_v44 = vunpack.c.l.b16 %v347_v43  ;;  %1778 = vmatmul.msk.bf16.vlgmr.msrb.gmra.mxu1 %vm350_vm11, %v344_v26  ;;  %v374_v45 = vsel %vm350_vm11, %v347_v43, 0 }
 0x244   :  { %383 = vmatpush.bf16.xpose.msra.mxu2 %v374_v45 }
 0x245   :  { %v489_v48 = vpack.c.b16 %v488_v44, %v488_v44 }
 0x246   :  { %v339_v49 = vpop.f32.mrf.mxu3 }
 0x247   :  { %v340_v50 = vadd.f32 %v2036_v46, %v339_v49  ;;  %490 = vrot.lane.b32.xlu1 %v489_v48, %s2145_s25  ;;  %485 = vrot.lane.b32.xlu0 %v484_v47, %s2145_s25 }
 0x249   :  { %v2364_v51 = vpack.c.bf16 %v340_v50, %v340_v50 }
 0x24b   :  { %v419_v52 = vsel %vm417_vm12, %v2364_v51, 0  ;;  %1779 = vmatmul.msk.bf16.vlgmr.msra.gmra.mxu2 %vm350_vm11, %v345_v39  ;;  %v536_v38 = vunpack.c.l.b16 %v2364_v51 }
 0x24c   :  { %428 = vmatpush.bf16.msra.mxu3 %v419_v52 }
 0x24d   :  { %v537_v39 = vpack.c.b16 %v536_v38, %v536_v38 }
 0x24e   :  { %v341_v53 = vpop.f32.mrf.mxu3 }
 0x24f   :  { %v342_v54 = vadd.f32 %v2036_v46, %v341_v53 }
 0x251   :  { %v2369_v55 = vpack.c.bf16 %v342_v54, %v342_v54 }
 0x253   :  { %v438_v56 = vsel %vm417_vm12, %v2369_v55, 0  ;;  %v560_v58 = vunpack.c.l.b16 %v2369_v55 }
 0x254   :  { %447 = vmatpush.bf16.msrb.mxu0 %v438_v56 }
 0x255   :  { %v561_v60 = vpack.c.b16 %v560_v58, %v560_v58 }
 0x293   :  { %v457_v0 = vpop.permute.xlu2 %456 }
 0x2b1   :  { %v462_v59 = vpop.permute.xlu0 %461 }
 0x2b2   :  { %v467_v61 = vsel %vm350_vm11, %v462_v59, 0 }
 0x2b3   :  { %476 = vmatpush.bf16.xpose.msra.mxu1 %v467_v61 }
 0x2b9   :  { %v491_v1 = vpop.permute.xlu1 %490  ;;  %v486_v10 = vpop.permute.xlu0 %485 }
 0x2ba   :  { %1782 = vmatmul.msk.bf16.vlgmr.msra.gmra.mxu1 %vm350_vm11, %v457_v0  ;;  %v496_v7 = vsel %vm350_vm11, %v491_v1, 0 }
 0x2bb   :  { %505 = vmatpush.bf16.xpose.msrb.mxu2 %v496_v7 }
 0x2c0   :  { %v366_v3 = vpop.f32.mrf.mxu1 }
 0x2c1   :  { %v367_v4 = vadd.f32 %v366_v3, %v2382_v8 }
 0x2c2   :  { %1783 = vmatmul.msk.bf16.vlgmr.msrb.gmra.mxu2 %vm350_vm11, %v486_v10 }
 0x2c3   :  { %v390_v6 = vsel %vm389_vm14, %v367_v4, -inf }
 0x2c4   :  { %391 = vmax.xlane.f32.xlu0 %v390_v6 }
 0x2c8   :  { %v368_v11 = vpop.f32.mrf.mxu1 }
 0x2ce   :  { %v385_v13 = vpop.f32.mrf.mxu2 }
 0x2cf   :  { %v386_v14 = vadd.f32 %v385_v13, %v2390_v12 }
 0x2d1   :  { %v393_v15 = vsel %vm389_vm14, %v386_v14, -inf }
 0x2d2   :  { %394 = vmax.xlane.f32.xlu2 %v393_v15 }
 0x2d6   :  { %v387_v16 = vpop.f32.mrf.mxu2 }
 0x337   :  { %v478_v17 = vpop.f32.mrf.mxu1  ;;  %v392_v18 = vpop.xlane.xlu0 %391 }
 0x338   :  { %v479_v19 = vadd.f32 %v478_v17, %v2382_v8  ;;  %v396_v22 = vsub.f32 %v367_v4, %v392_v18 }
 0x33a   :  { %v398_v23 = vmul.f32 1.442695, %v396_v22  ;;  %v511_v24 = vsel %vm389_vm14, %v479_v19, -inf  ;;  %v1981_v22 = vld [vmem:[%s2725_s12] sm:$0xff] }
 0x33b   :  { %512 = vmax.xlane.f32.xlu1 %v511_v24 }
 0x33c   :  { %2060 = vpow2.f32 %v398_v23 }
 0x33f   :  { %v480_v25 = vpop.f32.mrf.mxu1 }
 0x342   :  { %v2061_v26 = vpop.eup %2060 }
 0x343   :  { %v402_v27 = vsel %vm389_vm14, %v2061_v26, 0.0 }
 0x344   :  { %403 = vadd.xlane.f32.xlu2 %v402_v27 }
 0x345   :  { %v507_v28 = vpop.f32.mrf.mxu2  ;;  %v395_v29 = vpop.xlane.xlu2 %394 }
 0x346   :  { %v508_v30 = vadd.f32 %v507_v28, %v2390_v12  ;;  %v397_v31 = vsub.f32 %v386_v14, %v395_v29  ;;  %v1982_v14 = vld [vmem:[%s2725_s12 + $0x8] sm:$0xff]  ;;  %v2037_v29 = vld [vmem:[%s2726_s13] ss:$0 sm:$0xff] }
 0x347   :  { %623 = vmatpush.bf16.msrb.mxu1 %v1982_v14 }
 0x348   :  { %v400_v32 = vmul.f32 1.442695, %v397_v31  ;;  %v514_v33 = vsel %vm389_vm14, %v508_v30, -inf }
 0x349   :  { %515 = vmax.xlane.f32.xlu0 %v514_v33 }
 0x34a   :  { %2062 = vpow2.f32 %v400_v32 }
 0x34b   :  { %624 = vmatpush.bf16.msrb.mxu1 %v1981_v22 }
 0x34d   :  { %v509_v34 = vpop.f32.mrf.mxu2 }
 0x350   :  { %v2063_v35 = vpop.eup %2062 }
 0x351   :  { %v405_v37 = vsel %vm389_vm14, %v2063_v35, 0.0 }
 0x352   :  { %406 = vadd.xlane.f32.xlu0 %v405_v37 }
 0x366   :  { %538 = vrot.lane.b32.xlu0 %v537_v39, %s2145_s25 }
 0x3ae   :  { %v513_v40 = vpop.xlane.xlu1 %512 }
 0x3af   :  { %v517_v41 = vsub.f32 %v479_v19, %v513_v40 }
 0x3b1   :  { %v519_v42 = vmul.f32 1.442695, %v517_v41 }
 0x3b3   :  { %2064 = vpow2.f32 %v519_v42 }
 0x3b7   :  { %v404_v43 = vpop.xlane.xlu2 %403 }
 0x3b8   :  { %2066 = vrcp.f32 %v404_v43 }
 0x3b9   :  { %v2065_v44 = vpop.eup %2064 }
 0x3ba   :  { %v523_v45 = vsel %vm389_vm14, %v2065_v44, 0.0 }
 0x3bb   :  { %524 = vadd.xlane.f32.xlu1 %v523_v45 }
 0x3bc   :  { %v516_v46 = vpop.xlane.xlu0 %515 }
 0x3bd   :  { %v518_v47 = vsub.f32 %v508_v30, %v516_v46 }
 0x3be   :  { %v2067_v48 = vpop.eup %2066 }
 0x3bf   :  { %v410_v49 = vmul.f32 %v2067_v48, %v2061_v26  ;;  %v521_v50 = vmul.f32 1.442695, %v518_v47  ;;  %v1984_v48 = vld [vmem:[%s2729_s16 + $0x8] sm:$0xff] }
 0x3c0   :  { %725 = vmatpush.bf16.msra.mxu2 %v1984_v48 }
 0x3c1   :  { %v412_v52 = vpack.c.bf16 %v410_v49, %v410_v49  ;;  %2068 = vpow2.f32 %v521_v50  ;;  %v1983_v50 = vld [vmem:[%s2729_s16] sm:$0xff] }
 0x3c3   :  { %1780 = vmatmul.msk.bf16.vlgmr.msra.gmra.mxu3 %vm389_vm14, %v412_v52 }
 0x3c4   :  { %726 = vmatpush.bf16.msra.mxu2 %v1983_v50 }
 0x3c5   :  { %v407_v51 = vpop.xlane.xlu0 %406 }
 0x3c6   :  { %2070 = vrcp.f32 %v407_v51 }
 0x3c7   :  { %v2069_v53 = vpop.eup %2068 }
 0x3c8   :  { %v526_v54 = vsel %vm389_vm14, %v2069_v53, 0.0 }
 0x3c9   :  { %527 = vadd.xlane.f32.xlu2 %v526_v54 }
 0x3cc   :  { %v2071_v56 = vpop.eup %2070 }
 0x3cd   :  { %v411_v57 = vmul.f32 %v2071_v56, %v2063_v35 }
 0x3cf   :  { %v413_v59 = vpack.c.bf16 %v411_v57, %v411_v57 }
 0x3d1   :  { %1781 = vmatmul.msk.bf16.vlgmr.msrb.gmra.mxu0 %vm389_vm14, %v413_v59 }
 0x3d4   :  { %562 = vrot.lane.b32.xlu1 %v561_v60, %s2145_s25 }
 0x3d8   :  { %v539_v61 = vpop.permute.xlu0 %538 }
 0x3d9   :  { %v544_v62 = vsel %vm417_vm12, %v539_v61, 0 }
 0x3da   :  { %553 = vmatpush.bf16.msrb.mxu3 %v544_v62 }
 0x42e   :  { %v525_v63 = vpop.xlane.xlu1 %524 }
 0x42f   :  { %2072 = vrcp.f32 %v525_v63 }
 0x435   :  { %v2073_v0 = vpop.eup %2072 }
 0x436   :  { %v531_v1 = vmul.f32 %v2073_v0, %v2065_v44 }
 0x438   :  { %v533_v7 = vpack.c.bf16 %v531_v1, %v531_v1 }
 0x43a   :  { %1784 = vmatmul.msk.bf16.vlgmr.msrb.gmra.mxu3 %vm389_vm14, %v533_v7 }
 0x43c   :  { %v528_v2 = vpop.xlane.xlu2 %527 }
 0x43d   :  { %2074 = vrcp.f32 %v528_v2 }
 0x443   :  { %v2075_v55 = vpop.eup %2074 }
 0x444   :  { %v532_v3 = vmul.f32 %v2075_v55, %v2069_v53 }
 0x446   :  { %v563_v10 = vpop.permute.xlu1 %562  ;;  %v430_v4 = vpop.f32.mrf.mxu3  ;;  %v534_v6 = vpack.c.bf16 %v532_v3, %v532_v3 }
 0x447   :  { %v568_v5 = vsel %vm417_vm12, %v563_v10, 0 }
 0x448   :  { %577 = vmatpush.bf16.msra.mxu0 %v568_v5 }
 0x44b   :  { %1785 = vmatmul.msk.bf16.vlgmr.msra.gmra.mxu0 %vm389_vm14, %v534_v6  ;;  %v2038_v6 = vld [vmem:[%s2727_s14] ss:$0 sm:$0xff] }
 0x44e   :  { %v432_v9 = vpop.f32.mrf.mxu3  ;;  %v449_v11 = vpop.f32.mrf.mxu0 }
 0x456   :  { %v451_v13 = vpop.f32.mrf.mxu0 }
 0x4bd   :  { %v555_v15 = vpop.f32.mrf.mxu3 }
 0x4c5   :  { %v557_v16 = vpop.f32.mrf.mxu3 }
 0x4c8   :  { %v579_v17 = vpop.f32.mrf.mxu0 }
 0x4c9   :  { %v2020_v18 = vpack.i.bf16 %v579_v17, %v555_v15  ;;  %v2039_v17 = vld [vmem:[%s2728_s15] ss:$0 sm:$0xff] }
 0x4cb   :  { %2021 = vrot.lane.b32.xlu2 %v2020_v18, %s2146_s1 }
 0x4d0   :  { %v581_v19 = vpop.f32.mrf.mxu0 }
 0x525   :  { %v2022_v23 = vpop.permute.xlu2 %2021 }
 0x526   :  { %v2024_v24 = vunpack.i.h.bf16 %v2022_v23  ;;  %v2023_v25 = vunpack.i.l.bf16 %v2022_v23 }
 0x528   :  { %v592_v26 = vsel %vm350_vm11, %v449_v11, %v2024_v24  ;;  %v591_v27 = vsel %vm350_vm11, %v430_v4, %v2023_v25  ;;  %v2040_v24 = vld [vmem:[%s2730_s17] ss:$0 sm:$0xff] }
 0x529   :  { %v593_v28 = vpack.c.bf16 %v592_v26, %v591_v27  ;;  %v1992_v27 = vld [vmem:[%s2731_s18 + $0x38] sm:$0xff] }
 0x52a   :  { %890 = vmatpush.bf16.msra.mxu3 %v1992_v27 }
 0x52b   :  { %1794 = vmatmul.msk.bf16.vlgmr.msrb.gmra.mxu1 %vm151_vm3, %v593_v28 }
 0x5a8   :  { %v626_v30 = vpop.f32.mrf.mxu1 }
 0x5a9   :  { %v627_v31 = vadd.f32 %v2037_v29, %v626_v30  ;;  %v1991_v30 = vld [vmem:[%s2731_s18 + $0x30] sm:$0xff] }
 0x5aa   :  { %891 = vmatpush.bf16.msra.mxu3 %v1991_v30 }
 0x5ab   :  { %v631_v32 = vadd.f32 %v627_v31, %v2339_v20 }
 0x5ad   :  { %v635_v33 = vsel %vm151_vm3, %v631_v32, 0.0  ;;  %v643_v34 = vmul.f32 %v631_v32, %v631_v32 }
 0x5ae   :  { %636 = vadd.xlane.f32.xlu0 %v635_v33 }
 0x5af   :  { %v645_v35 = vsel %vm151_vm3, %v643_v34, 0.0 }
 0x5b0   :  { %v628_v37 = vpop.f32.mrf.mxu1  ;;  %646 = vadd.xlane.f32.xlu2 %v645_v35 }
 0x5b1   :  { %v629_v38 = vadd.f32 %v2037_v29, %v628_v37  ;;  %v1990_v37 = vld [vmem:[%s2731_s18 + $0x28] sm:$0xff] }
 0x5b2   :  { %892 = vmatpush.bf16.msra.mxu3 %v1990_v37 }
 0x5b3   :  { %v632_v39 = vadd.f32 %v629_v38, %v2341_v21 }
 0x5b5   :  { %v638_v40 = vsel %vm151_vm3, %v632_v39, 0.0  ;;  %v644_v41 = vmul.f32 %v632_v39, %v632_v39 }
 0x5b6   :  { %639 = vadd.xlane.f32.xlu1 %v638_v40 }
 0x5b7   :  { %v648_v42 = vsel %vm151_vm3, %v644_v41, 0.0 }
 0x5b8   :  { %649 = vadd.xlane.f32.xlu0 %v648_v42  ;;  %v1989_v42 = vld [vmem:[%s2731_s18 + $0x20] sm:$0xff] }
 0x5b9   :  { %893 = vmatpush.bf16.msra.mxu3 %v1989_v42 }
 0x621   :  { %v637_v43 = vpop.xlane.xlu0 %636 }
 0x622   :  { %v641_v20 = vmul.f32 %v637_v43, %v2307_v36 }
 0x623   :  { %v647_v44 = vpop.xlane.xlu2 %646 }
 0x624   :  { %v653_v45 = vmul.f32 %v641_v20, %v641_v20  ;;  %v651_v46 = vmul.f32 %v647_v44, %v2307_v36  ;;  %v659_v4 = vsub.f32 %v631_v32, %v641_v20 }
 0x626   :  { %v655_v47 = vsub.f32 %v651_v46, %v653_v45 }
 0x628   :  { %v657_v21 = vmax.f32 %v655_v47, 0.0  ;;  %v1988_v47 = vld [vmem:[%s2731_s18 + $0x18] sm:$0xff] }
 0x629   :  { %v640_v49 = vpop.xlane.xlu1 %639  ;;  %894 = vmatpush.bf16.msra.mxu3 %v1988_v47 }
 0x62a   :  { %v661_v52 = vadd.f32 1e-12, %v657_v21  ;;  %v642_v51 = vmul.f32 %v640_v49, %v2307_v36 }
 0x62b   :  { %v650_v53 = vpop.xlane.xlu0 %649 }
 0x62c   :  { %2076 = vrsqrt.f32 %v661_v52  ;;  %v654_v54 = vmul.f32 %v642_v51, %v642_v51  ;;  %v652_v56 = vmul.f32 %v650_v53, %v2307_v36  ;;  %vm669_vm0 = vweird.f32 %v661_v52 }
 0x62d   :  { %v660_v13 = vsub.f32 %v632_v39, %v642_v51 }
 0x62e   :  { %v656_v57 = vsub.f32 %v652_v56, %v654_v54  ;;  %v1987_v54 = vld [vmem:[%s2731_s18 + $0x10] sm:$0xff] }
 0x62f   :  { %895 = vmatpush.bf16.msra.mxu3 %v1987_v54 }
 0x630   :  { %v658_v58 = vmax.f32 %v656_v57, 0.0 }
 0x632   :  { %v2077_v59 = vpop.eup %2076  ;;  %v662_v61 = vadd.f32 1e-12, %v658_v58 }
 0x633   :  { %v664_v60 = vmul.f32 %v2077_v59, %v661_v52  ;;  %vm670_vm15 = vweird.f32 %v2077_v59 }
 0x634   :  { %2078 = vrsqrt.f32 %v662_v61  ;;  %vm671_vm1 = vmor %vm669_vm0, %vm670_vm15  ;;  %vm679_vm4 = vweird.f32 %v662_v61 }
 0x635   :  { %v665_v62 = vmul.f32 %v2077_v59, %v664_v60 }
 0x637   :  { %v666_v63 = vmul.f32 0.5, %v665_v62 }
 0x639   :  { %v667_v0 = vsub.f32 1.5, %v666_v63  ;;  %v1986_v63 = vld [vmem:[%s2731_s18 + $0x8] sm:$0xff] }
 0x63a   :  { %v2079_v1 = vpop.eup %2078  ;;  %896 = vmatpush.bf16.msra.mxu3 %v1986_v63 }
 0x63b   :  { %v668_v7 = vmul.f32 %v2077_v59, %v667_v0  ;;  %v674_v2 = vmul.f32 %v2079_v1, %v662_v61  ;;  %vm680_vm2 = vweird.f32 %v2079_v1 }
 0x63c   :  { %vm681_vm5 = vmor %vm679_vm4, %vm680_vm2 }
 0x63d   :  { %v675_v55 = vmul.f32 %v2079_v1, %v674_v2  ;;  %v672_v3 = vsel %vm671_vm1, %v2077_v59, %v668_v7 }
 0x63e   :  { %v683_v9 = vmul.f32 %v672_v3, %v659_v4  ;;  %v1985_v3 = vld [vmem:[%s2731_s18] sm:$0xff] }
 0x63f   :  { %v676_v10 = vmul.f32 0.5, %v675_v55  ;;  %897 = vmatpush.bf16.msra.mxu3 %v1985_v3 }
 0x640   :  { %v688_v15 = vmul.f32 %v2038_v6, %v683_v9 }
 0x641   :  { %v677_v5 = vsub.f32 1.5, %v676_v10 }
 0x642   :  { %v2447_v19 = vadd.f32 %v2039_v17, %v688_v15 }
 0x643   :  { %v678_v11 = vmul.f32 %v2079_v1, %v677_v5 }
 0x645   :  { %v682_v14 = vsel %vm681_vm5, %v2079_v1, %v678_v11 }
 0x646   :  { %v684_v16 = vmul.f32 %v682_v14, %v660_v13 }
 0x648   :  { %v689_v18 = vmul.f32 %v2038_v6, %v684_v16 }
 0x64a   :  { %v2449_v22 = vadd.f32 %v2039_v17, %v689_v18 }
 0x64c   :  { %v695_v23 = vpack.c.bf16 %v2449_v22, %v2447_v19 }
 0x64e   :  { %1803 = vmatmul.msk.bf16.vlgmr.msra.gmra.mxu2 %vm151_vm3, %v695_v23 }
 0x6d1   :  { %v728_v25 = vpop.f32.mrf.mxu2 }
 0x6d2   :  { %v2457_v26 = vadd.f32 %v2040_v24, %v728_v25 }
 0x6d4   :  { %v2463_v28 = vmul.f32 0.70710677, %v2457_v26 }
 0x6d6   :  { %v737_v29 = vmul.f32 %v2463_v28, %v2463_v28 }
 0x6d8   :  { %v738_v31 = vmin.f32 %v737_v29, 16.0 }
 0x6d9   :  { %v730_v32 = vpop.f32.mrf.mxu2 }
 0x6da   :  { %v739_v33 = vmul.f32 2.1237322e-06, %v738_v31  ;;  %v750_v34 = vmul.f32 3.8918573e-05, %v738_v31  ;;  %v2470_v35 = vadd.f32 %v2040_v24, %v730_v32 }
 0x6dc   :  { %v740_v38 = vadd.f32 0.00028619796, %v739_v33  ;;  %v751_v39 = vadd.f32 0.001143296, %v750_v34  ;;  %v2476_v40 = vmul.f32 0.70710677, %v2470_v35 }
 0x6dd   :  { %v734_v54 = vmul.f32 0.5, %v2470_v35 }
 0x6de   :  { %v752_v41 = vmul.f32 %v751_v39, %v738_v31  ;;  %v777_v43 = vmul.f32 %v2476_v40, %v2476_v40  ;;  %v741_v20 = vmul.f32 %v740_v38, %v738_v31 }
 0x6e0   :  { %v753_v44 = vadd.f32 0.014752088, %v752_v41  ;;  %v778_v45 = vmin.f32 %v777_v43, 16.0  ;;  %v742_v49 = vadd.f32 0.0036580483, %v741_v20 }
 0x6e2   :  { %v754_v46 = vmul.f32 %v753_v44, %v738_v31  ;;  %v779_v48 = vmul.f32 2.1237322e-06, %v778_v45  ;;  %v790_v21 = vmul.f32 3.8918573e-05, %v778_v45  ;;  %v743_v58 = vmul.f32 %v742_v49, %v738_v31 }
 0x6e4   :  { %v755_v50 = vadd.f32 0.112945676, %v754_v46  ;;  %v780_v52 = vadd.f32 0.00028619796, %v779_v48  ;;  %v791_v51 = vadd.f32 0.001143296, %v790_v21 }
 0x6e5   :  { %v744_v1 = vadd.f32 0.05243302, %v743_v58 }
 0x6e6   :  { %v756_v53 = vmul.f32 %v755_v50, %v738_v31  ;;  %v781_v56 = vmul.f32 %v780_v52, %v778_v45  ;;  %v792_v57 = vmul.f32 %v791_v51, %v778_v45 }
 0x6e7   :  { %v745_v4 = vmul.f32 %v744_v1, %v738_v31 }
 0x6e8   :  { %v757_v59 = vadd.f32 0.4994258, %v756_v53  ;;  %v782_v60 = vadd.f32 0.0036580483, %v781_v56  ;;  %v793_v61 = vadd.f32 0.014752088, %v792_v57 }
 0x6e9   :  { %v746_v13 = vadd.f32 0.18741608, %v745_v4  ;;  %v733_v53 = vmul.f32 0.5, %v2457_v26 }
 0x6ea   :  { %v758_v62 = vmul.f32 %v757_v59, %v738_v31  ;;  %v794_v0 = vmul.f32 %v793_v61, %v778_v45  ;;  %v783_v2 = vmul.f32 %v782_v60, %v778_v45  ;;  %v2041_v60 = vld [vmem:[%s2732_s19] ss:$0 sm:$0xff] }
 0x6eb   :  { %v747_v18 = vmul.f32 %v746_v13, %v738_v31  ;;  %v1998_v13 = vld [vmem:[%s2723_s10 + $0x18] sm:$0xff] }
 0x6ec   :  { %v759_v7 = vadd.f32 1.0, %v758_v62  ;;  %v795_v55 = vadd.f32 0.112945676, %v794_v0  ;;  %v784_v5 = vadd.f32 0.05243302, %v783_v2  ;;  %1072 = vmatpush.bf16.msrb.mxu2 %v1998_v13 }
 0x6ed   :  { %v748_v30 = vadd.f32 1.1283791, %v747_v18  ;;  %v1997_v18 = vld [vmem:[%s2723_s10 + $0x10] sm:$0xff] }
 0x6ee   :  { %2080 = vrcp.f32 %v759_v7  ;;  %v796_v10 = vmul.f32 %v795_v55, %v778_v45  ;;  %v785_v15 = vmul.f32 %v784_v5, %v778_v45  ;;  %v771_v24 = vand.u32 2147483648, %v759_v7 }
 0x6ef   :  { %v769_v27 = vand.u32 2147483647, %v759_v7  ;;  %vm765_vm7 = vweird.f32 %v759_v7  ;;  %v749_v41 = vmul.f32 %v748_v30, %v2463_v28 }
 0x6f0   :  { %v797_v6 = vadd.f32 0.4994258, %v796_v10  ;;  %v786_v25 = vadd.f32 0.18741608, %v785_v15  ;;  %v772_v34 = vor.u32 1.1754944e-38, %v771_v24  ;;  %1073 = vmatpush.bf16.msrb.mxu2 %v1997_v18 }
 0x6f1   :  { %vm770_vm9 = vcmp.eq.f32.partialorder %v769_v27, 8.507059e+37 }
 0x6f2   :  { %v798_v9 = vmul.f32 %v797_v6, %v778_v45  ;;  %v787_v37 = vmul.f32 %v786_v25, %v778_v45 }
 0x6f4   :  { %v2081_v11 = vpop.eup %2080  ;;  %v799_v16 = vadd.f32 1.0, %v798_v9  ;;  %v788_v31 = vadd.f32 1.1283791, %v787_v37 }
 0x6f5   :  { %v761_v14 = vmul.f32 %v2081_v11, %v759_v7  ;;  %vm766_vm6 = vweird.f32 %v2081_v11 }
 0x6f6   :  { %2082 = vrcp.f32 %v799_v16  ;;  %vm767_vm8 = vmor %vm765_vm7, %vm766_vm6  ;;  %v811_v43 = vand.u32 2147483648, %v799_v16  ;;  %v809_v46 = vand.u32 2147483647, %v799_v16  ;;  %vm805_vm13 = vweird.f32 %v799_v16 }
 0x6f7   :  { %v762_v17 = vsub.f32 1.0, %v761_v14  ;;  %v789_v49 = vmul.f32 %v788_v31, %v2476_v40 }
 0x6f8   :  { %v812_v48 = vor.u32 1.1754944e-38, %v811_v43  ;;  %vm810_vm0 = vcmp.eq.f32.partialorder %v809_v46, 8.507059e+37 }
 0x6f9   :  { %v763_v23 = vmul.f32 %v2081_v11, %v762_v17  ;;  %v1995_v17 = vld [vmem:[%s2721_s8 + $0x10] sm:$0xff] }
 0x6fb   :  { %v764_v29 = vadd.f32 %v2081_v11, %v763_v23 }
 0x6fc   :  { %v2083_v32 = vpop.eup %2082 }
 0x6fd   :  { %v768_v33 = vsel %vm767_vm8, %v2081_v11, %v764_v29  ;;  %v801_v38 = vmul.f32 %v2083_v32, %v799_v16  ;;  %vm806_vm10 = vweird.f32 %v2083_v32  ;;  %v1994_v11 = vld [vmem:[%s2750_s4 + $0x18] sm:$0xff]  ;;  %v1993_v16 = vld [vmem:[%s2750_s4 + $0x10] sm:$0xff] }
 0x6fe   :  { %v773_v39 = vsel %vm770_vm9, %v772_v34, %v768_v33  ;;  %vm807_vm15 = vmor %vm805_vm13, %vm806_vm10  ;;  %1000 = vmatpush.bf16.msrb.mxu0 %v1994_v11 }
 0x6ff   :  { %v802_v42 = vsub.f32 1.0, %v801_v38  ;;  %v774_v20 = vmul.f32 %v773_v39, %v749_v41 }
 0x701   :  { %v803_v44 = vmul.f32 %v2083_v32, %v802_v42  ;;  %v1804_v21 = vclamps-f32 %v774_v20, 1.0 }
 0x702   :  { %1001 = vmatpush.bf16.msrb.mxu0 %v1993_v16 }
 0x703   :  { %v804_v47 = vadd.f32 %v2083_v32, %v803_v44  ;;  %v817_v51 = vadd.f32 1.0, %v1804_v21  ;;  %v2042_v21 = vld [vmem:[%s2733_s20] ss:$0 sm:$0xff] }
 0x705   :  { %v808_v45 = vsel %vm807_vm15, %v2083_v32, %v804_v47  ;;  %v819_v57 = vmul.f32 %v817_v51, %v733_v53  ;;  %v2043_v53 = vld [vmem:[%s2734_s21] ss:$0 sm:$0xff] }
 0x706   :  { %v813_v50 = vsel %vm810_vm0, %v812_v48, %v808_v45 }
 0x707   :  { %v814_v52 = vmul.f32 %v813_v50, %v789_v49 }
 0x709   :  { %v1805_v28 = vclamps-f32 %v814_v52, 1.0 }
 0x70b   :  { %v818_v56 = vadd.f32 1.0, %v1805_v28 }
 0x70d   :  { %v820_v58 = vmul.f32 %v818_v56, %v734_v54 }
 0x70f   :  { %v821_v59 = vpack.c.bf16 %v820_v58, %v819_v57 }
 0x711   :  { %898 = vmatmul.bf16.vlgmr.msra.gmra.mxu3 %v821_v59  ;;  %v2044_v59 = vld [vmem:[%s2720_s7 + $0x1] ss:$0 sm:$0xff] }
 0x794   :  { %v899_v40 = vpop.f32.mrf.mxu3 }
 0x795   :  { %v900_v61 = vadd.f32 %v2041_v60, %v899_v40 }
 0x797   :  { %v2503_v62 = vadd.f32 %v900_v61, %v2447_v19 }
 0x799   :  { %v908_v63 = vsel %vm151_vm3, %v2503_v62, 0.0  ;;  %v916_v26 = vmul.f32 %v2503_v62, %v2503_v62 }
 0x79a   :  { %909 = vadd.xlane.f32.xlu1 %v908_v63 }
 0x79b   :  { %v918_v35 = vsel %vm151_vm3, %v916_v26, 0.0 }
 0x79c   :  { %v901_v0 = vpop.f32.mrf.mxu3  ;;  %919 = vadd.xlane.f32.xlu2 %v918_v35 }
 0x79d   :  { %v902_v1 = vadd.f32 %v2041_v60, %v901_v0  ;;  %v2045_v60 = vld [vmem:[%s2722_s9 + $0x1] ss:$0 sm:$0xff] }
 0x79e   :  { %v2046_v0 = vld [vmem:[%s2724_s11 + $0x1] ss:$0 sm:$0xff] }
 0x79f   :  { %v905_v7 = vadd.f32 %v902_v1, %v2449_v22  ;;  %v1996_v22 = vld [vmem:[%s2721_s8 + $0x18] sm:$0xff]  ;;  %s1719_s8 = sshll.u32 %s2735_s22, 4  ;;  %s1720_s8 = int_to_ptr.hbm [resolvable:$true] %s1719_s8 }
 0x7a0   :  { %1036 = vmatpush.bf16.msra.mxu1 %v1996_v22 }
 0x7a1   :  { %v911_v2 = vsel %vm151_vm3, %v905_v7, 0.0  ;;  %v917_v55 = vmul.f32 %v905_v7, %v905_v7 }
 0x7a2   :  { %912 = vadd.xlane.f32.xlu0 %v911_v2 }
 0x7a3   :  { %v921_v19 = vsel %vm151_vm3, %v917_v55, 0.0 }
 0x7a4   :  { %922 = vadd.xlane.f32.xlu1 %v921_v19  ;;  %1037 = vmatpush.bf16.msra.mxu1 %v1995_v17 }
 0x80d   :  { %v910_v3 = vpop.xlane.xlu1 %909 }
 0x80e   :  { %v914_v10 = vmul.f32 %v910_v3, %v2307_v36 }
 0x80f   :  { %v920_v4 = vpop.xlane.xlu2 %919 }
 0x810   :  { %v926_v5 = vmul.f32 %v914_v10, %v914_v10  ;;  %v924_v6 = vmul.f32 %v920_v4, %v2307_v36  ;;  %v932_v47 = vsub.f32 %v2503_v62, %v914_v10 }
 0x812   :  { %v928_v9 = vsub.f32 %v924_v6, %v926_v5 }
 0x814   :  { %v930_v14 = vmax.f32 %v928_v9, 0.0 }
 0x815   :  { %v913_v15 = vpop.xlane.xlu0 %912 }
 0x816   :  { %v934_v23 = vadd.f32 1e-12, %v930_v14  ;;  %v915_v24 = vmul.f32 %v913_v15, %v2307_v36 }
 0x817   :  { %v923_v25 = vpop.xlane.xlu1 %922 }
 0x818   :  { %2084 = vrsqrt.f32 %v934_v23  ;;  %v927_v27 = vmul.f32 %v915_v24, %v915_v24  ;;  %v925_v29 = vmul.f32 %v923_v25, %v2307_v36  ;;  %vm942_vm2 = vweird.f32 %v934_v23 }
 0x819   :  { %v933_v50 = vsub.f32 %v905_v7, %v915_v24 }
 0x81a   :  { %v929_v30 = vsub.f32 %v925_v29, %v927_v27 }
 0x81c   :  { %v931_v32 = vmax.f32 %v929_v30, 0.0 }
 0x81e   :  { %v2085_v33 = vpop.eup %2084  ;;  %v935_v37 = vadd.f32 1e-12, %v931_v32 }
 0x81f   :  { %v937_v34 = vmul.f32 %v2085_v33, %v934_v23  ;;  %vm943_vm1 = vweird.f32 %v2085_v33 }
 0x820   :  { %2086 = vrsqrt.f32 %v935_v37  ;;  %vm944_vm4 = vmor %vm942_vm2, %vm943_vm1  ;;  %vm952_vm6 = vweird.f32 %v935_v37 }
 0x821   :  { %v938_v38 = vmul.f32 %v2085_v33, %v937_v34 }
 0x823   :  { %v939_v39 = vmul.f32 0.5, %v938_v38 }
 0x825   :  { %v940_v41 = vsub.f32 1.5, %v939_v39 }
 0x826   :  { %v2087_v42 = vpop.eup %2086 }
 0x827   :  { %v941_v31 = vmul.f32 %v2085_v33, %v940_v41  ;;  %v947_v43 = vmul.f32 %v2087_v42, %v935_v37  ;;  %vm953_vm5 = vweird.f32 %v2087_v42 }
 0x828   :  { %vm954_vm7 = vmor %vm952_vm6, %vm953_vm5 }
 0x829   :  { %v948_v20 = vmul.f32 %v2087_v42, %v947_v43  ;;  %v945_v44 = vsel %vm944_vm4, %v2085_v33, %v941_v31 }
 0x82a   :  { %v956_v49 = vmul.f32 %v945_v44, %v932_v47 }
 0x82b   :  { %v949_v46 = vmul.f32 0.5, %v948_v20 }
 0x82c   :  { %v961_v51 = vmul.f32 %v2042_v21, %v956_v49 }
 0x82d   :  { %v950_v48 = vsub.f32 1.5, %v949_v46 }
 0x82e   :  { %v2542_v56 = vadd.f32 %v2043_v53, %v961_v51 }
 0x82f   :  { %v951_v45 = vmul.f32 %v2087_v42, %v950_v48 }
 0x831   :  { %v955_v52 = vsel %vm954_vm7, %v2087_v42, %v951_v45 }
 0x832   :  { %v957_v28 = vmul.f32 %v955_v52, %v933_v50 }
 0x834   :  { %v962_v54 = vmul.f32 %v2042_v21, %v957_v28 }
 0x836   :  { %v2544_v57 = vadd.f32 %v2043_v53, %v962_v54 }
 0x838   :  { %v968_v58 = vpack.c.bf16 %v2544_v57, %v2542_v56 }
 0x83a   :  { %1851 = vmatmul.msk.bf16.vlgmr.msrb.gmra.mxu0 %vm151_vm3, %v968_v58  ;;  %1865 = vmatmul.msk.bf16.vlgmr.msra.gmra.mxu1 %vm151_vm3, %v968_v58 }
 0x83b   :  { %1879 = vmatmul.msk.bf16.vlgmr.msrb.gmra.mxu2 %vm151_vm3, %v968_v58 }
 0x8b7   :  { %v1003_v40 = vpop.f32.mrf.mxu0  ;;  %v1039_v61 = vpop.f32.mrf.mxu1 }
 0x8b8   :  { %v1004_v62 = vadd.f32 %v2044_v59, %v1003_v40  ;;  %v1040_v63 = vadd.f32 %v2045_v60, %v1039_v61 }
 0x8ba   :  { %v1080_v26 = vpack.c.bf16 %v1004_v62, %v1004_v62  ;;  %v1082_v35 = vpack.c.bf16 %v1040_v63, %v1040_v63 }
 0x8bc   :  { %v1187_v1 = vunpack.c.l.b16 %v1080_v26  ;;  %v1090_v7 = vsel %vm350_vm11, %v1082_v35, 0  ;;  %v1192_v2 = vunpack.c.l.b16 %v1082_v35 }
 0x8bd   :  { %1099 = vmatpush.bf16.xpose.msra.mxu0 %v1090_v7 }
 0x8be   :  { %v1188_v55 = vpack.c.b16 %v1187_v1, %v1187_v1  ;;  %v1193_v19 = vpack.c.b16 %v1192_v2, %v1192_v2  ;;  %v1075_v3 = vpop.f32.mrf.mxu2 }
 0x8bf   :  { %v1076_v10 = vadd.f32 %v2046_v0, %v1075_v3  ;;  %v1005_v4 = vpop.f32.mrf.mxu0  ;;  %v1041_v5 = vpop.f32.mrf.mxu1 }
 0x8c0   :  { %v1006_v6 = vadd.f32 %v2044_v59, %v1005_v4  ;;  %v1042_v9 = vadd.f32 %v2045_v60, %v1041_v5  ;;  %1194 = vrot.lane.b32.xlu0 %v1193_v19, %s2145_s25  ;;  %1189 = vrot.lane.b32.xlu1 %v1188_v55, %s2145_s25 }
 0x8c1   :  { %v2563_v11 = vpack.c.bf16 %v1076_v10, %v1076_v10 }
 0x8c2   :  { %v1081_v22 = vpack.c.bf16 %v1006_v6, %v1006_v6  ;;  %v1083_v13 = vpack.c.bf16 %v1042_v9, %v1042_v9 }
 0x8c3   :  { %v1152_v14 = vsel %vm417_vm12, %v2563_v11, 0  ;;  %v1269_v62 = vunpack.c.l.b16 %v2563_v11 }
 0x8c4   :  { %v1216_v15 = vunpack.c.l.b16 %v1081_v22  ;;  %v1109_v16 = vsel %vm350_vm11, %v1083_v13, 0  ;;  %v1221_v17 = vunpack.c.l.b16 %v1083_v13  ;;  %1161 = vmatpush.bf16.msra.mxu2 %v1152_v14  ;;  %1880 = vmatmul.msk.bf16.vlgmr.msra.gmra.mxu0 %vm350_vm11, %v1080_v26 }
 0x8c5   :  { %1118 = vmatpush.bf16.xpose.msrb.mxu1 %v1109_v16  ;;  %v1270_v63 = vpack.c.b16 %v1269_v62, %v1269_v62 }
 0x8c6   :  { %v1217_v18 = vpack.c.b16 %v1216_v15, %v1216_v15  ;;  %v1222_v23 = vpack.c.b16 %v1221_v17, %v1221_v17  ;;  %v1077_v24 = vpop.f32.mrf.mxu2 }
 0x8c7   :  { %v1078_v25 = vadd.f32 %v2046_v0, %v1077_v24 }
 0x8c8   :  { %1223 = vrot.lane.b32.xlu2 %v1222_v23, %s2145_s25  ;;  %1218 = vrot.lane.b32.xlu0 %v1217_v18, %s2145_s25 }
 0x8c9   :  { %v2571_v27 = vpack.c.bf16 %v1078_v25, %v1078_v25 }
 0x8cb   :  { %v1171_v29 = vsel %vm417_vm12, %v2571_v27, 0  ;;  %v1293_v15 = vunpack.c.l.b16 %v2571_v27 }
 0x8cc   :  { %1180 = vmatpush.bf16.msrb.mxu3 %v1171_v29  ;;  %1881 = vmatmul.msk.bf16.vlgmr.msrb.gmra.mxu1 %vm350_vm11, %v1081_v22 }
 0x8cd   :  { %v1294_v16 = vpack.c.b16 %v1293_v15, %v1293_v15 }
 0x922   :  { %v1224_v30 = vpop.permute.xlu2 %1223 }
 0x923   :  { %v1229_v32 = vsel %vm350_vm11, %v1224_v30, 0 }
 0x924   :  { %1238 = vmatpush.bf16.xpose.msra.mxu1 %v1229_v32 }
 0x932   :  { %v1195_v33 = vpop.permute.xlu0 %1194  ;;  %v1190_v37 = vpop.permute.xlu1 %1189 }
 0x933   :  { %v1200_v34 = vsel %vm350_vm11, %v1195_v33, 0 }
 0x934   :  { %1209 = vmatpush.bf16.xpose.msrb.mxu0 %v1200_v34 }
 0x93a   :  { %v1219_v38 = vpop.permute.xlu0 %1218 }
 0x93b   :  { %1884 = vmatmul.msk.bf16.vlgmr.msrb.gmra.mxu0 %vm350_vm11, %v1190_v37  ;;  %1885 = vmatmul.msk.bf16.vlgmr.msra.gmra.mxu1 %vm350_vm11, %v1219_v38 }
 0x941   :  { %v1101_v39 = vpop.f32.mrf.mxu0 }
 0x942   :  { %v1102_v41 = vadd.f32 %v1101_v39, %v2382_v8 }
 0x944   :  { %v1124_v42 = vsel %vm389_vm14, %v1102_v41, -inf }
 0x945   :  { %1125 = vmax.xlane.f32.xlu2 %v1124_v42 }
 0x949   :  { %v1103_v31 = vpop.f32.mrf.mxu0  ;;  %v1120_v43 = vpop.f32.mrf.mxu1 }
 0x94a   :  { %v1121_v20 = vadd.f32 %v1120_v43, %v2390_v12  ;;  %v2000_v31 = vld [vmem:[%s2725_s12 + $0x18] sm:$0xff] }
 0x94b   :  { %1358 = vmatpush.bf16.msra.mxu0 %v2000_v31 }
 0x94c   :  { %v1127_v44 = vsel %vm389_vm14, %v1121_v20, -inf }
 0x94d   :  { %1128 = vmax.xlane.f32.xlu0 %v1127_v44 }
 0x951   :  { %v1122_v46 = vpop.f32.mrf.mxu1 }
 0x9b8   :  { %v1211_v47 = vpop.f32.mrf.mxu0  ;;  %v1240_v48 = vpop.f32.mrf.mxu1 }
 0x9b9   :  { %v1212_v21 = vadd.f32 %v1211_v47, %v2382_v8  ;;  %v1241_v49 = vadd.f32 %v1240_v48, %v2390_v12  ;;  %v1126_v45 = vpop.xlane.xlu2 %1125  ;;  %v1999_v48 = vld [vmem:[%s2725_s12 + $0x10] sm:$0xff] }
 0x9ba   :  { %v1130_v50 = vsub.f32 %v1102_v41, %v1126_v45  ;;  %1359 = vmatpush.bf16.msra.mxu0 %v1999_v48  ;;  %v2050_v48 = vld [vmem:[%s2730_s17 + $0x1] ss:$0 sm:$0xff] }
 0x9bb   :  { %v1244_v52 = vsel %vm389_vm14, %v1212_v21, -inf  ;;  %v1247_v51 = vsel %vm389_vm14, %v1241_v49, -inf }
 0x9bc   :  { %v1132_v28 = vmul.f32 1.442695, %v1130_v50  ;;  %1245 = vmax.xlane.f32.xlu1 %v1244_v52  ;;  %1248 = vmax.xlane.f32.xlu2 %v1247_v51 }
 0x9be   :  { %2088 = vpow2.f32 %v1132_v28  ;;  %v2047_v28 = vld [vmem:[%s2726_s13 + $0x1] ss:$0 sm:$0xff] }
 0x9c0   :  { %v1242_v53 = vpop.f32.mrf.mxu1  ;;  %v1129_v54 = vpop.xlane.xlu0 %1128 }
 0x9c1   :  { %v1131_v58 = vsub.f32 %v1121_v20, %v1129_v54  ;;  %v1213_v59 = vpop.f32.mrf.mxu0 }
 0x9c3   :  { %v1134_v60 = vmul.f32 1.442695, %v1131_v58 }
 0x9c4   :  { %v2089_v40 = vpop.eup %2088 }
 0x9c5   :  { %2090 = vpow2.f32 %v1134_v60  ;;  %v1136_v8 = vsel %vm389_vm14, %v2089_v40, 0.0 }
 0x9c6   :  { %1137 = vadd.xlane.f32.xlu0 %v1136_v8 }
 0x9cb   :  { %v2091_v12 = vpop.eup %2090 }
 0x9cc   :  { %v1139_v61 = vsel %vm389_vm14, %v2091_v12, 0.0 }
 0x9cd   :  { %1140 = vadd.xlane.f32.xlu1 %v1139_v61 }
 0x9e6   :  { %1271 = vrot.lane.b32.xlu1 %v1270_v63, %s2145_s25 }
 0xa2f   :  { %v1246_v26 = vpop.xlane.xlu1 %1245  ;;  %v1249_v35 = vpop.xlane.xlu2 %1248 }
 0xa30   :  { %v1250_v0 = vsub.f32 %v1212_v21, %v1246_v26  ;;  %v1251_v1 = vsub.f32 %v1241_v49, %v1249_v35 }
 0xa32   :  { %v1252_v7 = vmul.f32 1.442695, %v1250_v0  ;;  %v1254_v2 = vmul.f32 1.442695, %v1251_v1 }
 0xa34   :  { %2092 = vpow2.f32 %v1252_v7 }
 0xa35   :  { %2094 = vpow2.f32 %v1254_v2 }
 0xa39   :  { %v1138_v55 = vpop.xlane.xlu0 %1137 }
 0xa3a   :  { %v2093_v19 = vpop.eup %2092  ;;  %2096 = vrcp.f32 %v1138_v55  ;;  %v2002_v55 = vld [vmem:[%s2729_s16 + $0x18] sm:$0xff] }
 0xa3b   :  { %v2095_v3 = vpop.eup %2094  ;;  %v1256_v10 = vsel %vm389_vm14, %v2093_v19, 0.0  ;;  %1464 = vmatpush.bf16.msrb.mxu1 %v2002_v55 }
 0xa3c   :  { %1257 = vadd.xlane.f32.xlu2 %v1256_v10  ;;  %v1259_v4 = vsel %vm389_vm14, %v2095_v3, 0.0 }
 0xa3d   :  { %1260 = vadd.xlane.f32.xlu0 %v1259_v4 }
 0xa40   :  { %v2097_v5 = vpop.eup %2096  ;;  %v1141_v6 = vpop.xlane.xlu1 %1140 }
 0xa41   :  { %v1144_v9 = vmul.f32 %v2097_v5, %v2089_v40  ;;  %2098 = vrcp.f32 %v1141_v6 }
 0xa43   :  { %v1146_v11 = vpack.c.bf16 %v1144_v9, %v1144_v9 }
 0xa45   :  { %1882 = vmatmul.msk.bf16.vlgmr.msra.gmra.mxu2 %vm389_vm14, %v1146_v11 }
 0xa47   :  { %v2099_v22 = vpop.eup %2098 }
 0xa48   :  { %v1145_v13 = vmul.f32 %v2099_v22, %v2091_v12 }
 0xa4a   :  { %v1147_v14 = vpack.c.bf16 %v1145_v13, %v1145_v13 }
 0xa4c   :  { %1883 = vmatmul.msk.bf16.vlgmr.msrb.gmra.mxu3 %vm389_vm14, %v1147_v14 }
 0xa54   :  { %1295 = vrot.lane.b32.xlu2 %v1294_v16, %s2145_s25 }
 0xa58   :  { %v1272_v17 = vpop.permute.xlu1 %1271 }
 0xa59   :  { %v1277_v18 = vsel %vm417_vm12, %v1272_v17, 0 }
 0xa5a   :  { %1286 = vmatpush.bf16.msrb.mxu2 %v1277_v18 }
 0xaaf   :  { %v1258_v23 = vpop.xlane.xlu2 %1257 }
 0xab0   :  { %v1261_v24 = vpop.xlane.xlu0 %1260  ;;  %2100 = vrcp.f32 %v1258_v23 }
 0xab1   :  { %2102 = vrcp.f32 %v1261_v24 }
 0xab6   :  { %v2101_v25 = vpop.eup %2100 }
 0xab7   :  { %v2103_v29 = vpop.eup %2102  ;;  %v1264_v30 = vmul.f32 %v2101_v25, %v2093_v19  ;;  %v1296_v32 = vpop.permute.xlu2 %1295 }
 0xab8   :  { %v1265_v33 = vmul.f32 %v2103_v29, %v2095_v3  ;;  %v1301_v34 = vsel %vm417_vm12, %v1296_v32, 0  ;;  %v2001_v3 = vld [vmem:[%s2729_s16 + $0x10] sm:$0xff] }
 0xab9   :  { %v1266_v37 = vpack.c.bf16 %v1264_v30, %v1264_v30  ;;  %1310 = vmatpush.bf16.msra.mxu3 %v1301_v34  ;;  %1465 = vmatpush.bf16.msrb.mxu1 %v2001_v3 }
 0xaba   :  { %v1267_v27 = vpack.c.bf16 %v1265_v33, %v1265_v33 }
 0xabb   :  { %1886 = vmatmul.msk.bf16.vlgmr.msrb.gmra.mxu2 %vm389_vm14, %v1266_v37  ;;  %v2048_v37 = vld [vmem:[%s2727_s14 + $0x1] ss:$0 sm:$0xff]  ;;  %s2149_s14 = smov 8  }
 0xabc   :  { %1887 = vmatmul.msk.bf16.vlgmr.msra.gmra.mxu3 %vm389_vm14, %v1267_v27 }
 0xac8   :  { %v1163_v38 = vpop.f32.mrf.mxu2 }
 0xacf   :  { %v1182_v39 = vpop.f32.mrf.mxu3 }
 0xad0   :  { %v1165_v41 = vpop.f32.mrf.mxu2 }
 0xad7   :  { %v1184_v42 = vpop.f32.mrf.mxu3 }
 0xb3e   :  { %v1288_v43 = vpop.f32.mrf.mxu2 }
 0xb3f   :  { %v1312_v20 = vpop.f32.mrf.mxu3 }
 0xb40   :  { %v2025_v44 = vpack.i.bf16 %v1312_v20, %v1288_v43  ;;  %v2049_v43 = vld [vmem:[%s2728_s15 + $0x1] ss:$0 sm:$0xff] }
 0xb42   :  { %2026 = vrot.lane.b32.xlu0 %v2025_v44, %s2146_s1 }
 0xb46   :  { %v1290_v46 = vpop.f32.mrf.mxu2 }
 0xb47   :  { %v1314_v47 = vpop.f32.mrf.mxu3 }
 0xbb4   :  { %v2027_v21 = vpop.permute.xlu0 %2026 }
 0xbb5   :  { %v2029_v49 = vunpack.i.h.bf16 %v2027_v21  ;;  %v2028_v45 = vunpack.i.l.bf16 %v2027_v21 }
 0xbb7   :  { %v1325_v50 = vsel %vm350_vm11, %v1182_v39, %v2029_v49  ;;  %v1324_v52 = vsel %vm350_vm11, %v1163_v38, %v2028_v45  ;;  %v2010_v45 = vld [vmem:[%s2731_s18 + $0x78] sm:$0xff] }
 0xbb8   :  { %v1326_v51 = vpack.c.bf16 %v1325_v50, %v1324_v52  ;;  %1631 = vmatpush.bf16.msra.mxu2 %v2010_v45 }
 0xbba   :  { %1901 = vmatmul.msk.bf16.vlgmr.msra.gmra.mxu0 %vm151_vm3, %v1326_v51  ;;  %v2009_v51 = vld [vmem:[%s2731_s18 + $0x70] sm:$0xff] }
 0xbbc   :  { %1632 = vmatpush.bf16.msra.mxu2 %v2009_v51 }
 0xc37   :  { %v1361_v53 = vpop.f32.mrf.mxu0 }
 0xc38   :  { %v1362_v54 = vadd.f32 %v2047_v28, %v1361_v53 }
 0xc3a   :  { %v1366_v58 = vadd.f32 %v1362_v54, %v2542_v56 }
 0xc3c   :  { %v1372_v59 = vsel %vm151_vm3, %v1366_v58, 0.0  ;;  %v1380_v60 = vmul.f32 %v1366_v58, %v1366_v58 }
 0xc3d   :  { %1373 = vadd.xlane.f32.xlu0 %v1372_v59 }
 0xc3e   :  { %v1382_v40 = vsel %vm151_vm3, %v1380_v60, 0.0  ;;  %v2008_v60 = vld [vmem:[%s2731_s18 + $0x68] sm:$0xff] }
 0xc3f   :  { %v1363_v8 = vpop.f32.mrf.mxu0  ;;  %1383 = vadd.xlane.f32.xlu2 %v1382_v40  ;;  %1633 = vmatpush.bf16.msra.mxu2 %v2008_v60 }
 0xc40   :  { %v1364_v12 = vadd.f32 %v2047_v28, %v1363_v8 }
 0xc42   :  { %v1367_v61 = vadd.f32 %v1364_v12, %v2544_v57 }
 0xc44   :  { %v1375_v62 = vsel %vm151_vm3, %v1367_v61, 0.0  ;;  %v1381_v63 = vmul.f32 %v1367_v61, %v1367_v61 }
 0xc45   :  { %1376 = vadd.xlane.f32.xlu1 %v1375_v62  ;;  %v2007_v62 = vld [vmem:[%s2731_s18 + $0x60] sm:$0xff] }
 0xc46   :  { %v1385_v26 = vsel %vm151_vm3, %v1381_v63, 0.0  ;;  %1634 = vmatpush.bf16.msra.mxu2 %v2007_v62 }
 0xc47   :  { %1386 = vadd.xlane.f32.xlu0 %v1385_v26 }
 0xcb0   :  { %v1374_v35 = vpop.xlane.xlu0 %1373 }
 0xcb1   :  { %v1378_v56 = vmul.f32 %v1374_v35, %v2307_v36 }
 0xcb2   :  { %v1384_v0 = vpop.xlane.xlu2 %1383 }
 0xcb3   :  { %v1390_v1 = vmul.f32 %v1378_v56, %v1378_v56  ;;  %v1388_v7 = vmul.f32 %v1384_v0, %v2307_v36  ;;  %v1396_v33 = vsub.f32 %v1366_v58, %v1378_v56 }
 0xcb5   :  { %v1392_v2 = vsub.f32 %v1388_v7, %v1390_v1  ;;  %v2006_v1 = vld [vmem:[%s2731_s18 + $0x58] sm:$0xff] }
 0xcb6   :  { %1635 = vmatpush.bf16.msra.mxu2 %v2006_v1 }
 0xcb7   :  { %v1394_v57 = vmax.f32 %v1392_v2, 0.0 }
 0xcb8   :  { %v1377_v19 = vpop.xlane.xlu1 %1376 }
 0xcb9   :  { %v1398_v10 = vadd.f32 1e-12, %v1394_v57  ;;  %v1379_v4 = vmul.f32 %v1377_v19, %v2307_v36 }
 0xcba   :  { %v1387_v5 = vpop.xlane.xlu0 %1386 }
 0xcbb   :  { %2104 = vrsqrt.f32 %v1398_v10  ;;  %v1391_v6 = vmul.f32 %v1379_v4, %v1379_v4  ;;  %v1389_v9 = vmul.f32 %v1387_v5, %v2307_v36  ;;  %vm1406_vm12 = vweird.f32 %v1398_v10 }
 0xcbc   :  { %v1397_v39 = vsub.f32 %v1367_v61, %v1379_v4  ;;  %v2005_v4 = vld [vmem:[%s2731_s18 + $0x50] sm:$0xff] }
 0xcbd   :  { %v1393_v11 = vsub.f32 %v1389_v9, %v1391_v6  ;;  %1636 = vmatpush.bf16.msra.mxu2 %v2005_v4 }
 0xcbf   :  { %v1395_v22 = vmax.f32 %v1393_v11, 0.0 }
 0xcc1   :  { %v2105_v13 = vpop.eup %2104  ;;  %v1399_v15 = vadd.f32 1e-12, %v1395_v22 }
 0xcc2   :  { %v1401_v14 = vmul.f32 %v2105_v13, %v1398_v10  ;;  %vm1407_vm11 = vweird.f32 %v2105_v13 }
 0xcc3   :  { %2106 = vrsqrt.f32 %v1399_v15  ;;  %vm1408_vm14 = vmor %vm1406_vm12, %vm1407_vm11  ;;  %vm1416_vm9 = vweird.f32 %v1399_v15 }
 0xcc4   :  { %v1402_v16 = vmul.f32 %v2105_v13, %v1401_v14 }
 0xcc6   :  { %v1403_v17 = vmul.f32 0.5, %v1402_v16 }
 0xcc8   :  { %v1404_v18 = vsub.f32 1.5, %v1403_v17 }
 0xcc9   :  { %v2107_v23 = vpop.eup %2106 }
 0xcca   :  { %v1405_v24 = vmul.f32 %v2105_v13, %v1404_v18  ;;  %v1411_v25 = vmul.f32 %v2107_v23, %v1399_v15  ;;  %vm1417_vm8 = vweird.f32 %v2107_v23  ;;  %v2004_v15 = vld [vmem:[%s2731_s18 + $0x48] sm:$0xff] }
 0xccb   :  { %vm1418_vm10 = vmor %vm1416_vm9, %vm1417_vm8  ;;  %1637 = vmatpush.bf16.msra.mxu2 %v2004_v15 }
 0xccc   :  { %v1412_v29 = vmul.f32 %v2107_v23, %v1411_v25  ;;  %v1409_v30 = vsel %vm1408_vm14, %v2105_v13, %v1405_v24  ;;  %v2003_v25 = vld [vmem:[%s2731_s18 + $0x40] sm:$0xff] }
 0xccd   :  { %v1420_v27 = vmul.f32 %v1409_v30, %v1396_v33 }
 0xcce   :  { %v1413_v32 = vmul.f32 0.5, %v1412_v29 }
 0xccf   :  { %v1425_v42 = vmul.f32 %v2048_v37, %v1420_v27  ;;  %1638 = vmatpush.bf16.msra.mxu2 %v2003_v25 }
 0xcd0   :  { %v1414_v34 = vsub.f32 1.5, %v1413_v32 }
 0xcd1   :  { %v2637_v44 = vadd.f32 %v2049_v43, %v1425_v42 }
 0xcd2   :  { %v1415_v38 = vmul.f32 %v2107_v23, %v1414_v34 }
 0xcd4   :  { %v1419_v41 = vsel %vm1418_vm10, %v2107_v23, %v1415_v38 }
 0xcd5   :  { %v1421_v31 = vmul.f32 %v1419_v41, %v1397_v39 }
 0xcd7   :  { %v1426_v20 = vmul.f32 %v2048_v37, %v1421_v31 }
 0xcd9   :  { %v2639_v46 = vadd.f32 %v2049_v43, %v1426_v20 }
 0xcdb   :  { %v1432_v47 = vpack.c.bf16 %v2639_v46, %v2637_v44 }
 0xcdd   :  { %1917 = vmatmul.msk.bf16.vlgmr.msrb.gmra.mxu1 %vm151_vm3, %v1432_v47 }
 0xd5a   :  { %v1467_v21 = vpop.f32.mrf.mxu1 }
 0xd5b   :  { %v2647_v49 = vadd.f32 %v2050_v48, %v1467_v21 }
 0xd5d   :  { %v2653_v50 = vmul.f32 0.70710677, %v2647_v49 }
 0xd5f   :  { %v1476_v52 = vmul.f32 %v2653_v50, %v2653_v50 }
 0xd61   :  { %v1477_v28 = vmin.f32 %v1476_v52, 16.0 }
 0xd62   :  { %v1469_v53 = vpop.f32.mrf.mxu1 }
 0xd63   :  { %v1478_v54 = vmul.f32 2.1237322e-06, %v1477_v28  ;;  %v1489_v58 = vmul.f32 3.8918573e-05, %v1477_v28  ;;  %v2660_v59 = vadd.f32 %v2050_v48, %v1469_v53 }
 0xd65   :  { %v1479_v40 = vadd.f32 0.00028619796, %v1478_v54  ;;  %v1490_v8 = vadd.f32 0.001143296, %v1489_v58  ;;  %v2666_v12 = vmul.f32 0.70710677, %v2660_v59 }
 0xd67   :  { %v1491_v61 = vmul.f32 %v1490_v8, %v1477_v28  ;;  %v1516_v63 = vmul.f32 %v2666_v12, %v2666_v12  ;;  %v1480_v26 = vmul.f32 %v1479_v40, %v1477_v28 }
 0xd69   :  { %v1492_v35 = vadd.f32 0.014752088, %v1491_v61  ;;  %v1517_v56 = vmin.f32 %v1516_v63, 16.0  ;;  %v1481_v55 = vadd.f32 0.0036580483, %v1480_v26 }
 0xd6b   :  { %v1493_v0 = vmul.f32 %v1492_v35, %v1477_v28  ;;  %v1518_v7 = vmul.f32 2.1237322e-06, %v1517_v56  ;;  %v1529_v2 = vmul.f32 3.8918573e-05, %v1517_v56  ;;  %v1482_v9 = vmul.f32 %v1481_v55, %v1477_v28 }
 0xd6d   :  { %v1494_v57 = vadd.f32 0.112945676, %v1493_v0  ;;  %v1519_v19 = vadd.f32 0.00028619796, %v1518_v7  ;;  %v1530_v3 = vadd.f32 0.001143296, %v1529_v2 }
 0xd6e   :  { %v1483_v17 = vadd.f32 0.05243302, %v1482_v9  ;;  %v2051_v9 = vld [vmem:[%s2732_s19 + $0x1] ss:$0 sm:$0xff] }
 0xd6f   :  { %v1495_v10 = vmul.f32 %v1494_v57, %v1477_v28  ;;  %v1520_v5 = vmul.f32 %v1519_v19, %v1517_v56  ;;  %v1531_v6 = vmul.f32 %v1530_v3, %v1517_v56  ;;  %v1472_v19 = vmul.f32 0.5, %v2647_v49 }
 0xd70   :  { %v1484_v30 = vmul.f32 %v1483_v17, %v1477_v28  ;;  %v1473_v3 = vmul.f32 0.5, %v2660_v59 }
 0xd71   :  { %v1496_v11 = vadd.f32 0.4994258, %v1495_v10  ;;  %v1521_v22 = vadd.f32 0.0036580483, %v1520_v5  ;;  %v1532_v13 = vadd.f32 0.014752088, %v1531_v6 }
 0xd72   :  { %v1485_v27 = vadd.f32 0.18741608, %v1484_v30 }
 0xd73   :  { %v1497_v14 = vmul.f32 %v1496_v11, %v1477_v28  ;;  %v1533_v16 = vmul.f32 %v1532_v13, %v1517_v56  ;;  %v1522_v23 = vmul.f32 %v1521_v22, %v1517_v56 }
 0xd74   :  { %v1486_v31 = vmul.f32 %v1485_v27, %v1477_v28 }
 0xd75   :  { %v1498_v18 = vadd.f32 1.0, %v1497_v14  ;;  %v1534_v24 = vadd.f32 0.112945676, %v1533_v16  ;;  %v1523_v32 = vadd.f32 0.05243302, %v1522_v23 }
 0xd76   :  { %v1487_v45 = vadd.f32 1.1283791, %v1486_v31 }
 0xd77   :  { %2108 = vrcp.f32 %v1498_v18  ;;  %v1535_v29 = vmul.f32 %v1534_v24, %v1517_v56  ;;  %v1524_v39 = vmul.f32 %v1523_v32, %v1517_v56  ;;  %v1510_v20 = vand.u32 2147483648, %v1498_v18 }
 0xd78   :  { %v1508_v48 = vand.u32 2147483647, %v1498_v18  ;;  %vm1504_vm15 = vweird.f32 %v1498_v18  ;;  %v1488_v40 = vmul.f32 %v1487_v45, %v2653_v50 }
 0xd79   :  { %v1536_v33 = vadd.f32 0.4994258, %v1535_v29  ;;  %v1525_v47 = vadd.f32 0.18741608, %v1524_v39  ;;  %v1511_v53 = vor.u32 1.1754944e-38, %v1510_v20 }
 0xd7a   :  { %vm1509_vm1 = vcmp.eq.f32.partialorder %v1508_v48, 8.507059e+37 }
 0xd7b   :  { %v1537_v34 = vmul.f32 %v1536_v33, %v1517_v56  ;;  %v1526_v54 = vmul.f32 %v1525_v47, %v1517_v56 }
 0xd7d   :  { %v2109_v37 = vpop.eup %2108  ;;  %v1538_v41 = vadd.f32 1.0, %v1537_v34  ;;  %v1527_v28 = vadd.f32 1.1283791, %v1526_v54 }
 0xd7e   :  { %v1500_v38 = vmul.f32 %v2109_v37, %v1498_v18  ;;  %vm1505_vm13 = vweird.f32 %v2109_v37 }
 0xd7f   :  { %2110 = vrcp.f32 %v1538_v41  ;;  %vm1506_vm0 = vmor %vm1504_vm15, %vm1505_vm13  ;;  %v1550_v61 = vand.u32 2147483648, %v1538_v41  ;;  %v1548_v26 = vand.u32 2147483647, %v1538_v41  ;;  %vm1544_vm4 = vweird.f32 %v1538_v41 }
 0xd80   :  { %v1501_v42 = vsub.f32 1.0, %v1500_v38  ;;  %v1528_v7 = vmul.f32 %v1527_v28, %v2666_v12 }
 0xd81   :  { %v1551_v0 = vor.u32 1.1754944e-38, %v1550_v61  ;;  %vm1549_vm6 = vcmp.eq.f32.partialorder %v1548_v26, 8.507059e+37 }
 0xd82   :  { %v1502_v43 = vmul.f32 %v2109_v37, %v1501_v42 }
 0xd84   :  { %v1503_v21 = vadd.f32 %v2109_v37, %v1502_v43 }
 0xd85   :  { %v2111_v52 = vpop.eup %2110 }
 0xd86   :  { %v1507_v51 = vsel %vm1506_vm0, %v2109_v37, %v1503_v21  ;;  %v1540_v58 = vmul.f32 %v2111_v52, %v1538_v41  ;;  %vm1545_vm2 = vweird.f32 %v2111_v52 }
 0xd87   :  { %v1512_v60 = vsel %vm1509_vm1, %v1511_v53, %v1507_v51  ;;  %vm1546_vm5 = vmor %vm1544_vm4, %vm1545_vm2  ;;  %v2052_v53 = vld [vmem:[%s2733_s20 + $0x1] ss:$0 sm:$0xff]  ;;  %s2147_s20 = smov [#allocation2]  }
 0xd88   :  { %v1541_v8 = vsub.f32 1.0, %v1540_v58  ;;  %v1513_v62 = vmul.f32 %v1512_v60, %v1488_v40  ;;  %v2053_v40 = vld [vmem:[%s2734_s21 + $0x1] ss:$0 sm:$0xff]  ;;  %s1717_s16 = sshll.u32 %s2147_s20, 4  ;;  %s2148_s21 = smov 128   ;;  %s1718_s16 = int_to_ptr.vmem [resolvable:$true] %s1717_s16 }
 0xd8a   :  { %v1542_v63 = vmul.f32 %v2111_v52, %v1541_v8  ;;  %v1918_v1 = vclamps-f32 %v1513_v62, 1.0 }
 0xd8c   :  { %v1543_v35 = vadd.f32 %v2111_v52, %v1542_v63  ;;  %v1556_v57 = vadd.f32 1.0, %v1918_v1 }
 0xd8e   :  { %v1547_v56 = vsel %vm1546_vm5, %v2111_v52, %v1543_v35  ;;  %v1558_v4 = vmul.f32 %v1556_v57, %v1472_v19 }
 0xd8f   :  { %v1552_v2 = vsel %vm1549_vm6, %v1551_v0, %v1547_v56 }
 0xd90   :  { %v1553_v55 = vmul.f32 %v1552_v2, %v1528_v7 }
 0xd92   :  { %v1919_v50 = vclamps-f32 %v1553_v55, 1.0 }
 0xd94   :  { %v1557_v10 = vadd.f32 1.0, %v1919_v50 }
 0xd96   :  { %v1559_v5 = vmul.f32 %v1557_v10, %v1473_v3 }
 0xd98   :  { %v1560_v6 = vpack.c.bf16 %v1559_v5, %v1558_v4 }
 0xd9a   :  { %1639 = vmatmul.bf16.vlgmr.msra.gmra.mxu2 %v1560_v6 }
 0xe1d   :  { %v1640_v12 = vpop.f32.mrf.mxu2 }
 0xe1e   :  { %v1641_v11 = vadd.f32 %v2051_v9, %v1640_v12 }
 0xe20   :  { %v1645_v22 = vadd.f32 %v1641_v11, %v2637_v44 }
 0xe22   :  { %v1651_v13 = vsel %vm151_vm3, %v1645_v22, 0.0  ;;  %v1659_v14 = vmul.f32 %v1645_v22, %v1645_v22 }
 0xe23   :  { %1652 = vadd.xlane.f32.xlu1 %v1651_v13 }
 0xe24   :  { %v1661_v49 = vsel %vm151_vm3, %v1659_v14, 0.0 }
 0xe25   :  { %v1642_v59 = vpop.f32.mrf.mxu2  ;;  %1662 = vadd.xlane.f32.xlu0 %v1661_v49 }
 0xe26   :  { %v1643_v15 = vadd.f32 %v2051_v9, %v1642_v59 }
 0xe28   :  { %v1646_v16 = vadd.f32 %v1643_v15, %v2639_v46 }
 0xe2a   :  { %v1654_v17 = vsel %vm151_vm3, %v1646_v16, 0.0  ;;  %v1660_v18 = vmul.f32 %v1646_v16, %v1646_v16 }
 0xe2b   :  { %1655 = vadd.xlane.f32.xlu2 %v1654_v17 }
 0xe2c   :  { %v1664_v23 = vsel %vm151_vm3, %v1660_v18, 0.0 }
 0xe2d   :  { %1665 = vadd.xlane.f32.xlu1 %v1664_v23 }
 0xe96   :  { %v1653_v24 = vpop.xlane.xlu1 %1652 }
 0xe97   :  { %v1657_v44 = vmul.f32 %v1653_v24, %v2307_v36 }
 0xe98   :  { %v1663_v25 = vpop.xlane.xlu0 %1662 }
 0xe99   :  { %v1669_v29 = vmul.f32 %v1657_v44, %v1657_v44  ;;  %v1667_v30 = vmul.f32 %v1663_v25, %v2307_v36  ;;  %v1675_v51 = vsub.f32 %v1645_v22, %v1657_v44 }
 0xe9b   :  { %v1671_v32 = vsub.f32 %v1667_v30, %v1669_v29 }
 0xe9d   :  { %v1673_v33 = vmax.f32 %v1671_v32, 0.0 }
 0xe9e   :  { %v1656_v34 = vpop.xlane.xlu2 %1655 }
 0xe9f   :  { %v1677_v37 = vadd.f32 1e-12, %v1673_v33  ;;  %v1658_v46 = vmul.f32 %v1656_v34, %v2307_v36 }
 0xea0   :  { %v1666_v27 = vpop.xlane.xlu1 %1665 }
 0xea1   :  { %2112 = vrsqrt.f32 %v1677_v37  ;;  %v1670_v38 = vmul.f32 %v1658_v46, %v1658_v46  ;;  %v1668_v39 = vmul.f32 %v1666_v27, %v2307_v36  ;;  %vm1685_vm11 = vweird.f32 %v1677_v37 }
 0xea2   :  { %v1676_v26 = vsub.f32 %v1646_v16, %v1658_v46 }
 0xea3   :  { %v1672_v41 = vsub.f32 %v1668_v39, %v1670_v38 }
 0xea5   :  { %v1674_v42 = vmax.f32 %v1672_v41, 0.0 }
 0xea7   :  { %v2113_v31 = vpop.eup %2112  ;;  %v1678_v20 = vadd.f32 1e-12, %v1674_v42 }
 0xea8   :  { %v1680_v43 = vmul.f32 %v2113_v31, %v1677_v37  ;;  %vm1686_vm7 = vweird.f32 %v2113_v31 }
 0xea9   :  { %2114 = vrsqrt.f32 %v1678_v20  ;;  %vm1687_vm12 = vmor %vm1685_vm11, %vm1686_vm7  ;;  %vm1695_vm8 = vweird.f32 %v1678_v20 }
 0xeaa   :  { %v1681_v47 = vmul.f32 %v2113_v31, %v1680_v43 }
 0xeac   :  { %v1682_v48 = vmul.f32 0.5, %v1681_v47 }
 0xeae   :  { %v1683_v21 = vsub.f32 1.5, %v1682_v48 }
 0xeaf   :  { %v2115_v45 = vpop.eup %2114 }
 0xeb0   :  { %v1684_v52 = vmul.f32 %v2113_v31, %v1683_v21  ;;  %v1690_v36 = vmul.f32 %v2115_v45, %v1678_v20  ;;  %vm1696_vm14 = vweird.f32 %v2115_v45 }
 0xeb1   :  { %vm1697_vm9 = vmor %vm1695_vm8, %vm1696_vm14 }
 0xeb2   :  { %v1688_v54 = vsel %vm1687_vm12, %v2113_v31, %v1684_v52  ;;  %v1691_v60 = vmul.f32 %v2115_v45, %v1690_v36 }
 0xeb3   :  { %v1699_v58 = vmul.f32 %v1688_v54, %v1675_v51 }
 0xeb4   :  { %v1692_v28 = vmul.f32 0.5, %v1691_v60 }
 0xeb5   :  { %v1704_v8 = vmul.f32 %v2052_v53, %v1699_v58 }
 0xeb6   :  { %v1693_v61 = vsub.f32 1.5, %v1692_v28 }
 0xeb7   :  { %v1709_v62 = vadd.f32 %v2053_v40, %v1704_v8 }
 0xeb8   :  { %v1694_v63 = vmul.f32 %v2115_v45, %v1693_v61 }
 0xeb9   :  { %1711 = vst.msk [vmem:[#allocation2] sm:$0xff] %vm151_vm3, %v1709_v62 }
 0xeba   :  { %v1698_v35 = vsel %vm1697_vm9, %v2115_v45, %v1694_v63 }
 0xebb   :  { %v1700_v0 = vmul.f32 %v1698_v35, %v1676_v26 }
 0xebd   :  { %v1705_v1 = vmul.f32 %v2052_v53, %v1700_v0 }
 0xebf   :  { %v1710_v7 = vadd.f32 %v2053_v40, %v1705_v1 }
 0xec1   :  { %1712 = vst.msk [vmem:[#allocation2 + $0x8] sm:$0xff] %vm151_vm3, %v1710_v7 }
 0xec2   :  { %1725 = dma.vmem_to_hbm [thread:$0]  %s1718_s16, 256, %s1720_s8, [#allocation3], %s2148_s21, %s2148_s21, %s2149_s14  }
 0xec3   :  { %2140 = dma.done.wait [#allocation3], 256  }
 0xec4   :  { %2141 = vsyncadd [#allocation3], 4294967040 }
 0xec5   :  { %1730 = vsyncpa [#allocation3], 1 }

</bundles_post_ra>
